<compile_context>
chip_gen: v6e
topology: v6e:2x2x1
jax: 0.10.0
libtpu: 0.0.40
codegen_flags: <defaults>
</compile_context>

<pallas_src>
import jax
import jax.numpy as jnp
from jax import lax
from jax.experimental import pallas as pl
from jax.experimental.pallas import tpu as pltpu


def lstm_kernel(gx_ref,    # (T, B, 4H)  precomputed x@W_ih1 + b1, gates [i,f,o,g]
                whh1_ref,  # (H, 4H)     layer-0 hidden weights, gates [i,f,o,g]
                w2_ref,    # (2H, 4H)    fused [W_ih2; W_hh2],   gates [i,f,o,g]
                b2_ref,    # (1, 4H)     layer-1 combined bias,  gates [i,f,o,g]
                wfc_ref,   # (1, H)      fc weight (row vector)
                bfc_ref,   # (1, 1)      fc bias
                out_ref):  # (B, 1)
    T, B, G = gx_ref.shape
    H = G // 4

    whh1 = whh1_ref[...]
    w2 = w2_ref[...]
    # hoist the (1,4H)->(B,4H) bias broadcast out of the recurrence
    b2 = jnp.broadcast_to(b2_ref[...], (B, G))

    def gates_to_hc(gates, c):
        # gate layout [i | f | o | g]: one sigmoid over 3H lanes, one tanh over H
        s = jax.nn.sigmoid(gates[:, :3 * H])
        g = jnp.tanh(gates[:, 3 * H:])
        i = s[:, :H]
        f = s[:, H:2 * H]
        o = s[:, 2 * H:3 * H]
        c_new = f * c + i * g
        h_new = o * jnp.tanh(c_new)
        return h_new, c_new

    z = jnp.zeros((B, H), jnp.float32)
    h1, c1, h2, c2 = z, z, z, z

    # T is static and small: fully unroll the recurrence.
    for t in range(T):
        # layer 0: input projection already folded into gx
        gates1 = gx_ref[t] + jnp.dot(h1, whh1,
                                     preferred_element_type=jnp.float32)
        h1, c1 = gates_to_hc(gates1, c1)

        # layer 1: single fused (B,2H)@(2H,4H) matmul
        hh = jnp.concatenate([h1, h2], axis=1)            # (B, 2H)
        gates2 = jnp.dot(hh, w2,
                         preferred_element_type=jnp.float32) + b2
        h2, c2 = gates_to_hc(gates2, c2)

    # fc(h2): (B,H)*(1,H) VPU multiply + lane reduction (avoid N=1 MXU pass)
    out_ref[...] = (jnp.sum(h2 * wfc_ref[...], axis=-1, keepdims=True)
                    + bfc_ref[...])


def _reorder_gates(w, H):
    """Permute last-axis gate blocks from PyTorch [i,f,g,o] to [i,f,o,g]."""
    return jnp.concatenate(
        [w[..., :2 * H], w[..., 3 * H:4 * H], w[..., 2 * H:3 * H]], axis=-1)


def lstm_model_forward(x, params):
    """x: (B, T, I) float32, batch_first like the PyTorch module."""
    B, T, I = x.shape
    H = params["whh1"].shape[0]

    # ---- one-time parameter prep (gate reorder + layer-1 fusion) ----
    wih1 = _reorder_gates(params["wih1"], H)               # (I, 4H)
    whh1 = _reorder_gates(params["whh1"], H)               # (H, 4H)
    b1 = _reorder_gates(params["b1"], H)                   # (1, 4H)
    w2 = _reorder_gates(
        jnp.concatenate([params["wih2"], params["whh2"]], axis=0), H)  # (2H, 4H)
    b2 = _reorder_gates(params["b2"], H)                   # (1, 4H)
    wfc = params["wfc"].T                                  # (1, H)
    bfc = params["bfc"]                                    # (1, 1)

    # ---- hoist the layer-0 input projection out of the recurrence ----
    x_tm = jnp.transpose(x, (1, 0, 2))                     # (T, B, I)
    gx = jnp.einsum("tbi,ig->tbg", x_tm, wih1) + b1        # (T, B, 4H)

    # NOTE: at this size everything fits VMEM trivially; if T/B are scaled up
    # (esp. on v7x with 64 MiB VMEM) switch gx to a blocked-over-T BlockSpec,
    # and split the batch across TensorCores with a 'parallel' grid axis.
    vmem = pl.BlockSpec(memory_space=pltpu.MemorySpace.VMEM)
    out = pl.pallas_call(
        lstm_kernel,
        out_shape=jax.ShapeDtypeStruct((B, 1), jnp.float32),
        in_specs=[vmem] * 6,
        out_specs=vmem,
    )(gx, whh1, w2, b2, wfc, bfc)
    return out


def make_params(key, input_size=1, hidden_size=64):
    """Deterministic synthetic parameters (PyTorch-style uniform init)."""
    H = hidden_size
    ks = jax.random.split(key, 10)
    bound = 1.0 / jnp.sqrt(jnp.float32(H))

    def u(k, shape):
        return jax.random.uniform(k, shape, jnp.float32, -bound, bound)

    # stored pre-transposed for x @ W convention; biases combined (b_ih + b_hh)
    p = {
        "wih1": u(ks[0], (input_size, 4 * H)),
        "whh1": u(ks[1], (H, 4 * H)),
        "b1":   (u(ks[2], (1, 4 * H)) + u(ks[3], (1, 4 * H))),
        "wih2": u(ks[4], (H, 4 * H)),
        "whh2": u(ks[5], (H, 4 * H)),
        "b2":   (u(ks[6], (1, 4 * H)) + u(ks[7], (1, 4 * H))),
        "wfc":  u(ks[8], (H, 1)),
        "bfc":  u(ks[9], (1, 1)),
    }
    return p


def reference_forward(x, params):
    """Pure-JAX reference of the PyTorch forward (original [i,f,g,o] order)."""
    B, T, I = x.shape
    H = params["whh1"].shape[0]

    def cell(x_t, h, c, wih, whh, b):
        gates = x_t @ wih + h @ whh + b
        i = jax.nn.sigmoid(gates[:, 0 * H:1 * H])
        f = jax.nn.sigmoid(gates[:, 1 * H:2 * H])
        g = jnp.tanh(gates[:, 2 * H:3 * H])
        o = jax.nn.sigmoid(gates[:, 3 * H:4 * H])
        c = f * c + i * g
        h = o * jnp.tanh(c)
        return h, c

    def scan_fn(carry, x_t):
        h1, c1, h2, c2 = carry
        h1, c1 = cell(x_t, h1, c1, params["wih1"], params["whh1"], params["b1"])
        h2, c2 = cell(h1, h2, c2, params["wih2"], params["whh2"], params["b2"])
        return (h1, c1, h2, c2), None

    z = jnp.zeros((B, H), jnp.float32)
    (h1, c1, h2, c2), _ = lax.scan(scan_fn, (z, z, z, z),
                                   jnp.transpose(x, (1, 0, 2)))
    return h2 @ params["wfc"] + params["bfc"]


if __name__ == "__main__":
    key = jax.random.PRNGKey(0)
    k_x, k_p = jax.random.split(key)

    B, T, I, H = 2, 8, 1, 64
    x = jax.random.normal(k_x, (B, T, I), jnp.float32)
    params = make_params(k_p, input_size=I, hidden_size=H)

    out = lstm_model_forward(x, params)
    out = jax.block_until_ready(out)

    ref = reference_forward(x, params)
    assert out.shape == (B, 1)
    assert jnp.allclose(out, ref, atol=1e-4, rtol=1e-4)

    print("KERNEL_OK")
</pallas_src>

<mosaic_0001>
module attributes {stable_mosaic.version = 11 : i64} {
  func.func @lstm_kernel(%arg0: memref<8x2x256xf32, #tpu.memory_space<vmem>>, %arg1: memref<64x256xf32, #tpu.memory_space<vmem>>, %arg2: memref<128x256xf32, #tpu.memory_space<vmem>>, %arg3: memref<1x256xf32, #tpu.memory_space<vmem>>, %arg4: memref<1x64xf32, #tpu.memory_space<vmem>>, %arg5: memref<1x1xf32, #tpu.memory_space<vmem>>, %arg6: memref<2x1xf32, #tpu.memory_space<vmem>>) attributes {dimension_semantics = [], scalar_prefetch = 0 : i64, scratch_operands = 0 : i64, tpu.core_type = #tpu.core_type<tc>} {
    %c0 = arith.constant 0 : index
    %c0_0 = arith.constant 0 : index
    %0 = vector.load %arg1[%c0, %c0_0] : memref<64x256xf32, #tpu.memory_space<vmem>>, vector<64x256xf32>
    %c0_1 = arith.constant 0 : index
    %c0_2 = arith.constant 0 : index
    %1 = vector.load %arg2[%c0_1, %c0_2] : memref<128x256xf32, #tpu.memory_space<vmem>>, vector<128x256xf32>
    %c0_3 = arith.constant 0 : index
    %c0_4 = arith.constant 0 : index
    %2 = vector.load %arg3[%c0_3, %c0_4] : memref<1x256xf32, #tpu.memory_space<vmem>>, vector<1x256xf32>
    %3 = vector.shape_cast %2 : vector<1x256xf32> to vector<1x256xf32>
    %4 = vector.broadcast %3 : vector<1x256xf32> to vector<2x256xf32>
    %cst = arith.constant 0.000000e+00 : f32
    %5 = vector.broadcast %cst : f32 to vector<2x64xf32>
    %c0_5 = arith.constant 0 : index
    %c0_6 = arith.constant 0 : index
    %c0_7 = arith.constant 0 : index
    %6 = vector.load %arg0[%c0_5, %c0_6, %c0_7] : memref<8x2x256xf32, #tpu.memory_space<vmem>>, vector<1x2x256xf32>
    %7 = vector.shape_cast %6 : vector<1x2x256xf32> to vector<2x256xf32>
    %cst_8 = arith.constant dense<0.000000e+00> : vector<2x256xf32>
    %8 = tpu.matmul %5, %0, %cst_8 {dimension_numbers = #tpu.dot_dimension_numbers<[1], [0], [0], [1], [0, 0, 1, 1], [], []>} : vector<2x64xf32>, vector<64x256xf32>, vector<2x256xf32> -> vector<2x256xf32>
    %9 = arith.addf %7, %8 : vector<2x256xf32>
    %10 = vector.extract_strided_slice %9 {offsets = [0, 0], sizes = [2, 192], strides = [1, 1]} : vector<2x256xf32> to vector<2x192xf32>
    %11 = arith.negf %10 : vector<2x192xf32>
    %12 = math.exp %11 : vector<2x192xf32>
    %cst_9 = arith.constant 1.000000e+00 : f32
    %13 = vector.broadcast %cst_9 : f32 to vector<2x192xf32>
    %14 = arith.addf %13, %12 : vector<2x192xf32>
    %15 = arith.divf %13, %14 : vector<2x192xf32>
    %16 = vector.extract_strided_slice %9 {offsets = [0, 192], sizes = [2, 64], strides = [1, 1]} : vector<2x256xf32> to vector<2x64xf32>
    %17 = math.tanh %16 : vector<2x64xf32>
    %18 = vector.extract_strided_slice %15 {offsets = [0, 0], sizes = [2, 64], strides = [1, 1]} : vector<2x192xf32> to vector<2x64xf32>
    %19 = vector.extract_strided_slice %15 {offsets = [0, 64], sizes = [2, 64], strides = [1, 1]} : vector<2x192xf32> to vector<2x64xf32>
    %20 = vector.extract_strided_slice %15 {offsets = [0, 128], sizes = [2, 64], strides = [1, 1]} : vector<2x192xf32> to vector<2x64xf32>
    %21 = arith.mulf %19, %5 : vector<2x64xf32>
    %22 = arith.mulf %18, %17 : vector<2x64xf32>
    %23 = arith.addf %21, %22 : vector<2x64xf32>
    %24 = math.tanh %23 : vector<2x64xf32>
    %25 = arith.mulf %20, %24 : vector<2x64xf32>
    %26 = tpu.concatenate %25, %5 in 1 : vector<2x64xf32>, vector<2x64xf32> -> vector<2x128xf32>
    %cst_10 = arith.constant dense<0.000000e+00> : vector<2x256xf32>
    %27 = tpu.matmul %26, %1, %cst_10 {dimension_numbers = #tpu.dot_dimension_numbers<[1], [0], [0], [1], [0, 0, 1, 1], [], []>} : vector<2x128xf32>, vector<128x256xf32>, vector<2x256xf32> -> vector<2x256xf32>
    %28 = arith.addf %27, %4 : vector<2x256xf32>
    %29 = vector.extract_strided_slice %28 {offsets = [0, 0], sizes = [2, 192], strides = [1, 1]} : vector<2x256xf32> to vector<2x192xf32>
    %30 = arith.negf %29 : vector<2x192xf32>
    %31 = math.exp %30 : vector<2x192xf32>
    %cst_11 = arith.constant 1.000000e+00 : f32
    %32 = vector.broadcast %cst_11 : f32 to vector<2x192xf32>
    %33 = arith.addf %32, %31 : vector<2x192xf32>
    %34 = arith.divf %32, %33 : vector<2x192xf32>
    %35 = vector.extract_strided_slice %28 {offsets = [0, 192], sizes = [2, 64], strides = [1, 1]} : vector<2x256xf32> to vector<2x64xf32>
    %36 = math.tanh %35 : vector<2x64xf32>
    %37 = vector.extract_strided_slice %34 {offsets = [0, 0], sizes = [2, 64], strides = [1, 1]} : vector<2x192xf32> to vector<2x64xf32>
    %38 = vector.extract_strided_slice %34 {offsets = [0, 64], sizes = [2, 64], strides = [1, 1]} : vector<2x192xf32> to vector<2x64xf32>
    %39 = vector.extract_strided_slice %34 {offsets = [0, 128], sizes = [2, 64], strides = [1, 1]} : vector<2x192xf32> to vector<2x64xf32>
    %40 = arith.mulf %38, %5 : vector<2x64xf32>
    %41 = arith.mulf %37, %36 : vector<2x64xf32>
    %42 = arith.addf %40, %41 : vector<2x64xf32>
    %43 = math.tanh %42 : vector<2x64xf32>
    %44 = arith.mulf %39, %43 : vector<2x64xf32>
    %c1 = arith.constant 1 : index
    %c0_12 = arith.constant 0 : index
    %c0_13 = arith.constant 0 : index
    %45 = vector.load %arg0[%c1, %c0_12, %c0_13] : memref<8x2x256xf32, #tpu.memory_space<vmem>>, vector<1x2x256xf32>
    %46 = vector.shape_cast %45 : vector<1x2x256xf32> to vector<2x256xf32>
    %cst_14 = arith.constant dense<0.000000e+00> : vector<2x256xf32>
    %47 = tpu.matmul %25, %0, %cst_14 {dimension_numbers = #tpu.dot_dimension_numbers<[1], [0], [0], [1], [0, 0, 1, 1], [], []>} : vector<2x64xf32>, vector<64x256xf32>, vector<2x256xf32> -> vector<2x256xf32>
    %48 = arith.addf %46, %47 : vector<2x256xf32>
    %49 = vector.extract_strided_slice %48 {offsets = [0, 0], sizes = [2, 192], strides = [1, 1]} : vector<2x256xf32> to vector<2x192xf32>
    %50 = arith.negf %49 : vector<2x192xf32>
    %51 = math.exp %50 : vector<2x192xf32>
    %cst_15 = arith.constant 1.000000e+00 : f32
    %52 = vector.broadcast %cst_15 : f32 to vector<2x192xf32>
    %53 = arith.addf %52, %51 : vector<2x192xf32>
    %54 = arith.divf %52, %53 : vector<2x192xf32>
    %55 = vector.extract_strided_slice %48 {offsets = [0, 192], sizes = [2, 64], strides = [1, 1]} : vector<2x256xf32> to vector<2x64xf32>
    %56 = math.tanh %55 : vector<2x64xf32>
    %57 = vector.extract_strided_slice %54 {offsets = [0, 0], sizes = [2, 64], strides = [1, 1]} : vector<2x192xf32> to vector<2x64xf32>
    %58 = vector.extract_strided_slice %54 {offsets = [0, 64], sizes = [2, 64], strides = [1, 1]} : vector<2x192xf32> to vector<2x64xf32>
    %59 = vector.extract_strided_slice %54 {offsets = [0, 128], sizes = [2, 64], strides = [1, 1]} : vector<2x192xf32> to vector<2x64xf32>
    %60 = arith.mulf %58, %23 : vector<2x64xf32>
    %61 = arith.mulf %57, %56 : vector<2x64xf32>
    %62 = arith.addf %60, %61 : vector<2x64xf32>
    %63 = math.tanh %62 : vector<2x64xf32>
    %64 = arith.mulf %59, %63 : vector<2x64xf32>
    %65 = tpu.concatenate %64, %44 in 1 : vector<2x64xf32>, vector<2x64xf32> -> vector<2x128xf32>
    %cst_16 = arith.constant dense<0.000000e+00> : vector<2x256xf32>
    %66 = tpu.matmul %65, %1, %cst_16 {dimension_numbers = #tpu.dot_dimension_numbers<[1], [0], [0], [1], [0, 0, 1, 1], [], []>} : vector<2x128xf32>, vector<128x256xf32>, vector<2x256xf32> -> vector<2x256xf32>
    %67 = arith.addf %66, %4 : vector<2x256xf32>
    %68 = vector.extract_strided_slice %67 {offsets = [0, 0], sizes = [2, 192], strides = [1, 1]} : vector<2x256xf32> to vector<2x192xf32>
    %69 = arith.negf %68 : vector<2x192xf32>
    %70 = math.exp %69 : vector<2x192xf32>
    %cst_17 = arith.constant 1.000000e+00 : f32
    %71 = vector.broadcast %cst_17 : f32 to vector<2x192xf32>
    %72 = arith.addf %71, %70 : vector<2x192xf32>
    %73 = arith.divf %71, %72 : vector<2x192xf32>
    %74 = vector.extract_strided_slice %67 {offsets = [0, 192], sizes = [2, 64], strides = [1, 1]} : vector<2x256xf32> to vector<2x64xf32>
    %75 = math.tanh %74 : vector<2x64xf32>
    %76 = vector.extract_strided_slice %73 {offsets = [0, 0], sizes = [2, 64], strides = [1, 1]} : vector<2x192xf32> to vector<2x64xf32>
    %77 = vector.extract_strided_slice %73 {offsets = [0, 64], sizes = [2, 64], strides = [1, 1]} : vector<2x192xf32> to vector<2x64xf32>
    %78 = vector.extract_strided_slice %73 {offsets = [0, 128], sizes = [2, 64], strides = [1, 1]} : vector<2x192xf32> to vector<2x64xf32>
    %79 = arith.mulf %77, %42 : vector<2x64xf32>
    %80 = arith.mulf %76, %75 : vector<2x64xf32>
    %81 = arith.addf %79, %80 : vector<2x64xf32>
    %82 = math.tanh %81 : vector<2x64xf32>
    %83 = arith.mulf %78, %82 : vector<2x64xf32>
    %c2 = arith.constant 2 : index
    %c0_18 = arith.constant 0 : index
    %c0_19 = arith.constant 0 : index
    %84 = vector.load %arg0[%c2, %c0_18, %c0_19] : memref<8x2x256xf32, #tpu.memory_space<vmem>>, vector<1x2x256xf32>
    %85 = vector.shape_cast %84 : vector<1x2x256xf32> to vector<2x256xf32>
    %cst_20 = arith.constant dense<0.000000e+00> : vector<2x256xf32>
    %86 = tpu.matmul %64, %0, %cst_20 {dimension_numbers = #tpu.dot_dimension_numbers<[1], [0], [0], [1], [0, 0, 1, 1], [], []>} : vector<2x64xf32>, vector<64x256xf32>, vector<2x256xf32> -> vector<2x256xf32>
    %87 = arith.addf %85, %86 : vector<2x256xf32>
    %88 = vector.extract_strided_slice %87 {offsets = [0, 0], sizes = [2, 192], strides = [1, 1]} : vector<2x256xf32> to vector<2x192xf32>
    %89 = arith.negf %88 : vector<2x192xf32>
    %90 = math.exp %89 : vector<2x192xf32>
    %cst_21 = arith.constant 1.000000e+00 : f32
    %91 = vector.broadcast %cst_21 : f32 to vector<2x192xf32>
    %92 = arith.addf %91, %90 : vector<2x192xf32>
    %93 = arith.divf %91, %92 : vector<2x192xf32>
    %94 = vector.extract_strided_slice %87 {offsets = [0, 192], sizes = [2, 64], strides = [1, 1]} : vector<2x256xf32> to vector<2x64xf32>
    %95 = math.tanh %94 : vector<2x64xf32>
    %96 = vector.extract_strided_slice %93 {offsets = [0, 0], sizes = [2, 64], strides = [1, 1]} : vector<2x192xf32> to vector<2x64xf32>
    %97 = vector.extract_strided_slice %93 {offsets = [0, 64], sizes = [2, 64], strides = [1, 1]} : vector<2x192xf32> to vector<2x64xf32>
    %98 = vector.extract_strided_slice %93 {offsets = [0, 128], sizes = [2, 64], strides = [1, 1]} : vector<2x192xf32> to vector<2x64xf32>
    %99 = arith.mulf %97, %62 : vector<2x64xf32>
    %100 = arith.mulf %96, %95 : vector<2x64xf32>
    %101 = arith.addf %99, %100 : vector<2x64xf32>
    %102 = math.tanh %101 : vector<2x64xf32>
    %103 = arith.mulf %98, %102 : vector<2x64xf32>
    %104 = tpu.concatenate %103, %83 in 1 : vector<2x64xf32>, vector<2x64xf32> -> vector<2x128xf32>
    %cst_22 = arith.constant dense<0.000000e+00> : vector<2x256xf32>
    %105 = tpu.matmul %104, %1, %cst_22 {dimension_numbers = #tpu.dot_dimension_numbers<[1], [0], [0], [1], [0, 0, 1, 1], [], []>} : vector<2x128xf32>, vector<128x256xf32>, vector<2x256xf32> -> vector<2x256xf32>
    %106 = arith.addf %105, %4 : vector<2x256xf32>
    %107 = vector.extract_strided_slice %106 {offsets = [0, 0], sizes = [2, 192], strides = [1, 1]} : vector<2x256xf32> to vector<2x192xf32>
    %108 = arith.negf %107 : vector<2x192xf32>
    %109 = math.exp %108 : vector<2x192xf32>
    %cst_23 = arith.constant 1.000000e+00 : f32
    %110 = vector.broadcast %cst_23 : f32 to vector<2x192xf32>
    %111 = arith.addf %110, %109 : vector<2x192xf32>
    %112 = arith.divf %110, %111 : vector<2x192xf32>
    %113 = vector.extract_strided_slice %106 {offsets = [0, 192], sizes = [2, 64], strides = [1, 1]} : vector<2x256xf32> to vector<2x64xf32>
    %114 = math.tanh %113 : vector<2x64xf32>
    %115 = vector.extract_strided_slice %112 {offsets = [0, 0], sizes = [2, 64], strides = [1, 1]} : vector<2x192xf32> to vector<2x64xf32>
    %116 = vector.extract_strided_slice %112 {offsets = [0, 64], sizes = [2, 64], strides = [1, 1]} : vector<2x192xf32> to vector<2x64xf32>
    %117 = vector.extract_strided_slice %112 {offsets = [0, 128], sizes = [2, 64], strides = [1, 1]} : vector<2x192xf32> to vector<2x64xf32>
    %118 = arith.mulf %116, %81 : vector<2x64xf32>
    %119 = arith.mulf %115, %114 : vector<2x64xf32>
    %120 = arith.addf %118, %119 : vector<2x64xf32>
    %121 = math.tanh %120 : vector<2x64xf32>
    %122 = arith.mulf %117, %121 : vector<2x64xf32>
    %c3 = arith.constant 3 : index
    %c0_24 = arith.constant 0 : index
    %c0_25 = arith.constant 0 : index
    %123 = vector.load %arg0[%c3, %c0_24, %c0_25] : memref<8x2x256xf32, #tpu.memory_space<vmem>>, vector<1x2x256xf32>
    %124 = vector.shape_cast %123 : vector<1x2x256xf32> to vector<2x256xf32>
    %cst_26 = arith.constant dense<0.000000e+00> : vector<2x256xf32>
    %125 = tpu.matmul %103, %0, %cst_26 {dimension_numbers = #tpu.dot_dimension_numbers<[1], [0], [0], [1], [0, 0, 1, 1], [], []>} : vector<2x64xf32>, vector<64x256xf32>, vector<2x256xf32> -> vector<2x256xf32>
    %126 = arith.addf %124, %125 : vector<2x256xf32>
    %127 = vector.extract_strided_slice %126 {offsets = [0, 0], sizes = [2, 192], strides = [1, 1]} : vector<2x256xf32> to vector<2x192xf32>
    %128 = arith.negf %127 : vector<2x192xf32>
    %129 = math.exp %128 : vector<2x192xf32>
    %cst_27 = arith.constant 1.000000e+00 : f32
    %130 = vector.broadcast %cst_27 : f32 to vector<2x192xf32>
    %131 = arith.addf %130, %129 : vector<2x192xf32>
    %132 = arith.divf %130, %131 : vector<2x192xf32>
    %133 = vector.extract_strided_slice %126 {offsets = [0, 192], sizes = [2, 64], strides = [1, 1]} : vector<2x256xf32> to vector<2x64xf32>
    %134 = math.tanh %133 : vector<2x64xf32>
    %135 = vector.extract_strided_slice %132 {offsets = [0, 0], sizes = [2, 64], strides = [1, 1]} : vector<2x192xf32> to vector<2x64xf32>
    %136 = vector.extract_strided_slice %132 {offsets = [0, 64], sizes = [2, 64], strides = [1, 1]} : vector<2x192xf32> to vector<2x64xf32>
    %137 = vector.extract_strided_slice %132 {offsets = [0, 128], sizes = [2, 64], strides = [1, 1]} : vector<2x192xf32> to vector<2x64xf32>
    %138 = arith.mulf %136, %101 : vector<2x64xf32>
    %139 = arith.mulf %135, %134 : vector<2x64xf32>
    %140 = arith.addf %138, %139 : vector<2x64xf32>
    %141 = math.tanh %140 : vector<2x64xf32>
    %142 = arith.mulf %137, %141 : vector<2x64xf32>
    %143 = tpu.concatenate %142, %122 in 1 : vector<2x64xf32>, vector<2x64xf32> -> vector<2x128xf32>
    %cst_28 = arith.constant dense<0.000000e+00> : vector<2x256xf32>
    %144 = tpu.matmul %143, %1, %cst_28 {dimension_numbers = #tpu.dot_dimension_numbers<[1], [0], [0], [1], [0, 0, 1, 1], [], []>} : vector<2x128xf32>, vector<128x256xf32>, vector<2x256xf32> -> vector<2x256xf32>
    %145 = arith.addf %144, %4 : vector<2x256xf32>
    %146 = vector.extract_strided_slice %145 {offsets = [0, 0], sizes = [2, 192], strides = [1, 1]} : vector<2x256xf32> to vector<2x192xf32>
    %147 = arith.negf %146 : vector<2x192xf32>
    %148 = math.exp %147 : vector<2x192xf32>
    %cst_29 = arith.constant 1.000000e+00 : f32
    %149 = vector.broadcast %cst_29 : f32 to vector<2x192xf32>
    %150 = arith.addf %149, %148 : vector<2x192xf32>
    %151 = arith.divf %149, %150 : vector<2x192xf32>
    %152 = vector.extract_strided_slice %145 {offsets = [0, 192], sizes = [2, 64], strides = [1, 1]} : vector<2x256xf32> to vector<2x64xf32>
    %153 = math.tanh %152 : vector<2x64xf32>
    %154 = vector.extract_strided_slice %151 {offsets = [0, 0], sizes = [2, 64], strides = [1, 1]} : vector<2x192xf32> to vector<2x64xf32>
    %155 = vector.extract_strided_slice %151 {offsets = [0, 64], sizes = [2, 64], strides = [1, 1]} : vector<2x192xf32> to vector<2x64xf32>
    %156 = vector.extract_strided_slice %151 {offsets = [0, 128], sizes = [2, 64], strides = [1, 1]} : vector<2x192xf32> to vector<2x64xf32>
    %157 = arith.mulf %155, %120 : vector<2x64xf32>
    %158 = arith.mulf %154, %153 : vector<2x64xf32>
    %159 = arith.addf %157, %158 : vector<2x64xf32>
    %160 = math.tanh %159 : vector<2x64xf32>
    %161 = arith.mulf %156, %160 : vector<2x64xf32>
    %c4 = arith.constant 4 : index
    %c0_30 = arith.constant 0 : index
    %c0_31 = arith.constant 0 : index
    %162 = vector.load %arg0[%c4, %c0_30, %c0_31] : memref<8x2x256xf32, #tpu.memory_space<vmem>>, vector<1x2x256xf32>
    %163 = vector.shape_cast %162 : vector<1x2x256xf32> to vector<2x256xf32>
    %cst_32 = arith.constant dense<0.000000e+00> : vector<2x256xf32>
    %164 = tpu.matmul %142, %0, %cst_32 {dimension_numbers = #tpu.dot_dimension_numbers<[1], [0], [0], [1], [0, 0, 1, 1], [], []>} : vector<2x64xf32>, vector<64x256xf32>, vector<2x256xf32> -> vector<2x256xf32>
    %165 = arith.addf %163, %164 : vector<2x256xf32>
    %166 = vector.extract_strided_slice %165 {offsets = [0, 0], sizes = [2, 192], strides = [1, 1]} : vector<2x256xf32> to vector<2x192xf32>
    %167 = arith.negf %166 : vector<2x192xf32>
    %168 = math.exp %167 : vector<2x192xf32>
    %cst_33 = arith.constant 1.000000e+00 : f32
    %169 = vector.broadcast %cst_33 : f32 to vector<2x192xf32>
    %170 = arith.addf %169, %168 : vector<2x192xf32>
    %171 = arith.divf %169, %170 : vector<2x192xf32>
    %172 = vector.extract_strided_slice %165 {offsets = [0, 192], sizes = [2, 64], strides = [1, 1]} : vector<2x256xf32> to vector<2x64xf32>
    %173 = math.tanh %172 : vector<2x64xf32>
    %174 = vector.extract_strided_slice %171 {offsets = [0, 0], sizes = [2, 64], strides = [1, 1]} : vector<2x192xf32> to vector<2x64xf32>
    %175 = vector.extract_strided_slice %171 {offsets = [0, 64], sizes = [2, 64], strides = [1, 1]} : vector<2x192xf32> to vector<2x64xf32>
    %176 = vector.extract_strided_slice %171 {offsets = [0, 128], sizes = [2, 64], strides = [1, 1]} : vector<2x192xf32> to vector<2x64xf32>
    %177 = arith.mulf %175, %140 : vector<2x64xf32>
    %178 = arith.mulf %174, %173 : vector<2x64xf32>
    %179 = arith.addf %177, %178 : vector<2x64xf32>
    %180 = math.tanh %179 : vector<2x64xf32>
    %181 = arith.mulf %176, %180 : vector<2x64xf32>
    %182 = tpu.concatenate %181, %161 in 1 : vector<2x64xf32>, vector<2x64xf32> -> vector<2x128xf32>
    %cst_34 = arith.constant dense<0.000000e+00> : vector<2x256xf32>
    %183 = tpu.matmul %182, %1, %cst_34 {dimension_numbers = #tpu.dot_dimension_numbers<[1], [0], [0], [1], [0, 0, 1, 1], [], []>} : vector<2x128xf32>, vector<128x256xf32>, vector<2x256xf32> -> vector<2x256xf32>
    %184 = arith.addf %183, %4 : vector<2x256xf32>
    %185 = vector.extract_strided_slice %184 {offsets = [0, 0], sizes = [2, 192], strides = [1, 1]} : vector<2x256xf32> to vector<2x192xf32>
    %186 = arith.negf %185 : vector<2x192xf32>
    %187 = math.exp %186 : vector<2x192xf32>
    %cst_35 = arith.constant 1.000000e+00 : f32
    %188 = vector.broadcast %cst_35 : f32 to vector<2x192xf32>
    %189 = arith.addf %188, %187 : vector<2x192xf32>
    %190 = arith.divf %188, %189 : vector<2x192xf32>
    %191 = vector.extract_strided_slice %184 {offsets = [0, 192], sizes = [2, 64], strides = [1, 1]} : vector<2x256xf32> to vector<2x64xf32>
    %192 = math.tanh %191 : vector<2x64xf32>
    %193 = vector.extract_strided_slice %190 {offsets = [0, 0], sizes = [2, 64], strides = [1, 1]} : vector<2x192xf32> to vector<2x64xf32>
    %194 = vector.extract_strided_slice %190 {offsets = [0, 64], sizes = [2, 64], strides = [1, 1]} : vector<2x192xf32> to vector<2x64xf32>
    %195 = vector.extract_strided_slice %190 {offsets = [0, 128], sizes = [2, 64], strides = [1, 1]} : vector<2x192xf32> to vector<2x64xf32>
    %196 = arith.mulf %194, %159 : vector<2x64xf32>
    %197 = arith.mulf %193, %192 : vector<2x64xf32>
    %198 = arith.addf %196, %197 : vector<2x64xf32>
    %199 = math.tanh %198 : vector<2x64xf32>
    %200 = arith.mulf %195, %199 : vector<2x64xf32>
    %c5 = arith.constant 5 : index
    %c0_36 = arith.constant 0 : index
    %c0_37 = arith.constant 0 : index
    %201 = vector.load %arg0[%c5, %c0_36, %c0_37] : memref<8x2x256xf32, #tpu.memory_space<vmem>>, vector<1x2x256xf32>
    %202 = vector.shape_cast %201 : vector<1x2x256xf32> to vector<2x256xf32>
    %cst_38 = arith.constant dense<0.000000e+00> : vector<2x256xf32>
    %203 = tpu.matmul %181, %0, %cst_38 {dimension_numbers = #tpu.dot_dimension_numbers<[1], [0], [0], [1], [0, 0, 1, 1], [], []>} : vector<2x64xf32>, vector<64x256xf32>, vector<2x256xf32> -> vector<2x256xf32>
    %204 = arith.addf %202, %203 : vector<2x256xf32>
    %205 = vector.extract_strided_slice %204 {offsets = [0, 0], sizes = [2, 192], strides = [1, 1]} : vector<2x256xf32> to vector<2x192xf32>
    %206 = arith.negf %205 : vector<2x192xf32>
    %207 = math.exp %206 : vector<2x192xf32>
    %cst_39 = arith.constant 1.000000e+00 : f32
    %208 = vector.broadcast %cst_39 : f32 to vector<2x192xf32>
    %209 = arith.addf %208, %207 : vector<2x192xf32>
    %210 = arith.divf %208, %209 : vector<2x192xf32>
    %211 = vector.extract_strided_slice %204 {offsets = [0, 192], sizes = [2, 64], strides = [1, 1]} : vector<2x256xf32> to vector<2x64xf32>
    %212 = math.tanh %211 : vector<2x64xf32>
    %213 = vector.extract_strided_slice %210 {offsets = [0, 0], sizes = [2, 64], strides = [1, 1]} : vector<2x192xf32> to vector<2x64xf32>
    %214 = vector.extract_strided_slice %210 {offsets = [0, 64], sizes = [2, 64], strides = [1, 1]} : vector<2x192xf32> to vector<2x64xf32>
    %215 = vector.extract_strided_slice %210 {offsets = [0, 128], sizes = [2, 64], strides = [1, 1]} : vector<2x192xf32> to vector<2x64xf32>
    %216 = arith.mulf %214, %179 : vector<2x64xf32>
    %217 = arith.mulf %213, %212 : vector<2x64xf32>
    %218 = arith.addf %216, %217 : vector<2x64xf32>
    %219 = math.tanh %218 : vector<2x64xf32>
    %220 = arith.mulf %215, %219 : vector<2x64xf32>
    %221 = tpu.concatenate %220, %200 in 1 : vector<2x64xf32>, vector<2x64xf32> -> vector<2x128xf32>
    %cst_40 = arith.constant dense<0.000000e+00> : vector<2x256xf32>
    %222 = tpu.matmul %221, %1, %cst_40 {dimension_numbers = #tpu.dot_dimension_numbers<[1], [0], [0], [1], [0, 0, 1, 1], [], []>} : vector<2x128xf32>, vector<128x256xf32>, vector<2x256xf32> -> vector<2x256xf32>
    %223 = arith.addf %222, %4 : vector<2x256xf32>
    %224 = vector.extract_strided_slice %223 {offsets = [0, 0], sizes = [2, 192], strides = [1, 1]} : vector<2x256xf32> to vector<2x192xf32>
    %225 = arith.negf %224 : vector<2x192xf32>
    %226 = math.exp %225 : vector<2x192xf32>
    %cst_41 = arith.constant 1.000000e+00 : f32
    %227 = vector.broadcast %cst_41 : f32 to vector<2x192xf32>
    %228 = arith.addf %227, %226 : vector<2x192xf32>
    %229 = arith.divf %227, %228 : vector<2x192xf32>
    %230 = vector.extract_strided_slice %223 {offsets = [0, 192], sizes = [2, 64], strides = [1, 1]} : vector<2x256xf32> to vector<2x64xf32>
    %231 = math.tanh %230 : vector<2x64xf32>
    %232 = vector.extract_strided_slice %229 {offsets = [0, 0], sizes = [2, 64], strides = [1, 1]} : vector<2x192xf32> to vector<2x64xf32>
    %233 = vector.extract_strided_slice %229 {offsets = [0, 64], sizes = [2, 64], strides = [1, 1]} : vector<2x192xf32> to vector<2x64xf32>
    %234 = vector.extract_strided_slice %229 {offsets = [0, 128], sizes = [2, 64], strides = [1, 1]} : vector<2x192xf32> to vector<2x64xf32>
    %235 = arith.mulf %233, %198 : vector<2x64xf32>
    %236 = arith.mulf %232, %231 : vector<2x64xf32>
    %237 = arith.addf %235, %236 : vector<2x64xf32>
    %238 = math.tanh %237 : vector<2x64xf32>
    %239 = arith.mulf %234, %238 : vector<2x64xf32>
    %c6 = arith.constant 6 : index
    %c0_42 = arith.constant 0 : index
    %c0_43 = arith.constant 0 : index
    %240 = vector.load %arg0[%c6, %c0_42, %c0_43] : memref<8x2x256xf32, #tpu.memory_space<vmem>>, vector<1x2x256xf32>
    %241 = vector.shape_cast %240 : vector<1x2x256xf32> to vector<2x256xf32>
    %cst_44 = arith.constant dense<0.000000e+00> : vector<2x256xf32>
    %242 = tpu.matmul %220, %0, %cst_44 {dimension_numbers = #tpu.dot_dimension_numbers<[1], [0], [0], [1], [0, 0, 1, 1], [], []>} : vector<2x64xf32>, vector<64x256xf32>, vector<2x256xf32> -> vector<2x256xf32>
    %243 = arith.addf %241, %242 : vector<2x256xf32>
    %244 = vector.extract_strided_slice %243 {offsets = [0, 0], sizes = [2, 192], strides = [1, 1]} : vector<2x256xf32> to vector<2x192xf32>
    %245 = arith.negf %244 : vector<2x192xf32>
    %246 = math.exp %245 : vector<2x192xf32>
    %cst_45 = arith.constant 1.000000e+00 : f32
    %247 = vector.broadcast %cst_45 : f32 to vector<2x192xf32>
    %248 = arith.addf %247, %246 : vector<2x192xf32>
    %249 = arith.divf %247, %248 : vector<2x192xf32>
    %250 = vector.extract_strided_slice %243 {offsets = [0, 192], sizes = [2, 64], strides = [1, 1]} : vector<2x256xf32> to vector<2x64xf32>
    %251 = math.tanh %250 : vector<2x64xf32>
    %252 = vector.extract_strided_slice %249 {offsets = [0, 0], sizes = [2, 64], strides = [1, 1]} : vector<2x192xf32> to vector<2x64xf32>
    %253 = vector.extract_strided_slice %249 {offsets = [0, 64], sizes = [2, 64], strides = [1, 1]} : vector<2x192xf32> to vector<2x64xf32>
    %254 = vector.extract_strided_slice %249 {offsets = [0, 128], sizes = [2, 64], strides = [1, 1]} : vector<2x192xf32> to vector<2x64xf32>
    %255 = arith.mulf %253, %218 : vector<2x64xf32>
    %256 = arith.mulf %252, %251 : vector<2x64xf32>
    %257 = arith.addf %255, %256 : vector<2x64xf32>
    %258 = math.tanh %257 : vector<2x64xf32>
    %259 = arith.mulf %254, %258 : vector<2x64xf32>
    %260 = tpu.concatenate %259, %239 in 1 : vector<2x64xf32>, vector<2x64xf32> -> vector<2x128xf32>
    %cst_46 = arith.constant dense<0.000000e+00> : vector<2x256xf32>
    %261 = tpu.matmul %260, %1, %cst_46 {dimension_numbers = #tpu.dot_dimension_numbers<[1], [0], [0], [1], [0, 0, 1, 1], [], []>} : vector<2x128xf32>, vector<128x256xf32>, vector<2x256xf32> -> vector<2x256xf32>
    %262 = arith.addf %261, %4 : vector<2x256xf32>
    %263 = vector.extract_strided_slice %262 {offsets = [0, 0], sizes = [2, 192], strides = [1, 1]} : vector<2x256xf32> to vector<2x192xf32>
    %264 = arith.negf %263 : vector<2x192xf32>
    %265 = math.exp %264 : vector<2x192xf32>
    %cst_47 = arith.constant 1.000000e+00 : f32
    %266 = vector.broadcast %cst_47 : f32 to vector<2x192xf32>
    %267 = arith.addf %266, %265 : vector<2x192xf32>
    %268 = arith.divf %266, %267 : vector<2x192xf32>
    %269 = vector.extract_strided_slice %262 {offsets = [0, 192], sizes = [2, 64], strides = [1, 1]} : vector<2x256xf32> to vector<2x64xf32>
    %270 = math.tanh %269 : vector<2x64xf32>
    %271 = vector.extract_strided_slice %268 {offsets = [0, 0], sizes = [2, 64], strides = [1, 1]} : vector<2x192xf32> to vector<2x64xf32>
    %272 = vector.extract_strided_slice %268 {offsets = [0, 64], sizes = [2, 64], strides = [1, 1]} : vector<2x192xf32> to vector<2x64xf32>
    %273 = vector.extract_strided_slice %268 {offsets = [0, 128], sizes = [2, 64], strides = [1, 1]} : vector<2x192xf32> to vector<2x64xf32>
    %274 = arith.mulf %272, %237 : vector<2x64xf32>
    %275 = arith.mulf %271, %270 : vector<2x64xf32>
    %276 = arith.addf %274, %275 : vector<2x64xf32>
    %277 = math.tanh %276 : vector<2x64xf32>
    %278 = arith.mulf %273, %277 : vector<2x64xf32>
    %c7 = arith.constant 7 : index
    %c0_48 = arith.constant 0 : index
    %c0_49 = arith.constant 0 : index
    %279 = vector.load %arg0[%c7, %c0_48, %c0_49] : memref<8x2x256xf32, #tpu.memory_space<vmem>>, vector<1x2x256xf32>
    %280 = vector.shape_cast %279 : vector<1x2x256xf32> to vector<2x256xf32>
    %cst_50 = arith.constant dense<0.000000e+00> : vector<2x256xf32>
    %281 = tpu.matmul %259, %0, %cst_50 {dimension_numbers = #tpu.dot_dimension_numbers<[1], [0], [0], [1], [0, 0, 1, 1], [], []>} : vector<2x64xf32>, vector<64x256xf32>, vector<2x256xf32> -> vector<2x256xf32>
    %282 = arith.addf %280, %281 : vector<2x256xf32>
    %283 = vector.extract_strided_slice %282 {offsets = [0, 0], sizes = [2, 192], strides = [1, 1]} : vector<2x256xf32> to vector<2x192xf32>
    %284 = arith.negf %283 : vector<2x192xf32>
    %285 = math.exp %284 : vector<2x192xf32>
    %cst_51 = arith.constant 1.000000e+00 : f32
    %286 = vector.broadcast %cst_51 : f32 to vector<2x192xf32>
    %287 = arith.addf %286, %285 : vector<2x192xf32>
    %288 = arith.divf %286, %287 : vector<2x192xf32>
    %289 = vector.extract_strided_slice %282 {offsets = [0, 192], sizes = [2, 64], strides = [1, 1]} : vector<2x256xf32> to vector<2x64xf32>
    %290 = math.tanh %289 : vector<2x64xf32>
    %291 = vector.extract_strided_slice %288 {offsets = [0, 0], sizes = [2, 64], strides = [1, 1]} : vector<2x192xf32> to vector<2x64xf32>
    %292 = vector.extract_strided_slice %288 {offsets = [0, 64], sizes = [2, 64], strides = [1, 1]} : vector<2x192xf32> to vector<2x64xf32>
    %293 = vector.extract_strided_slice %288 {offsets = [0, 128], sizes = [2, 64], strides = [1, 1]} : vector<2x192xf32> to vector<2x64xf32>
    %294 = arith.mulf %292, %257 : vector<2x64xf32>
    %295 = arith.mulf %291, %290 : vector<2x64xf32>
    %296 = arith.addf %294, %295 : vector<2x64xf32>
    %297 = math.tanh %296 : vector<2x64xf32>
    %298 = arith.mulf %293, %297 : vector<2x64xf32>
    %299 = tpu.concatenate %298, %278 in 1 : vector<2x64xf32>, vector<2x64xf32> -> vector<2x128xf32>
    %cst_52 = arith.constant dense<0.000000e+00> : vector<2x256xf32>
    %300 = tpu.matmul %299, %1, %cst_52 {dimension_numbers = #tpu.dot_dimension_numbers<[1], [0], [0], [1], [0, 0, 1, 1], [], []>} : vector<2x128xf32>, vector<128x256xf32>, vector<2x256xf32> -> vector<2x256xf32>
    %301 = arith.addf %300, %4 : vector<2x256xf32>
    %302 = vector.extract_strided_slice %301 {offsets = [0, 0], sizes = [2, 192], strides = [1, 1]} : vector<2x256xf32> to vector<2x192xf32>
    %303 = arith.negf %302 : vector<2x192xf32>
    %304 = math.exp %303 : vector<2x192xf32>
    %cst_53 = arith.constant 1.000000e+00 : f32
    %305 = vector.broadcast %cst_53 : f32 to vector<2x192xf32>
    %306 = arith.addf %305, %304 : vector<2x192xf32>
    %307 = arith.divf %305, %306 : vector<2x192xf32>
    %308 = vector.extract_strided_slice %301 {offsets = [0, 192], sizes = [2, 64], strides = [1, 1]} : vector<2x256xf32> to vector<2x64xf32>
    %309 = math.tanh %308 : vector<2x64xf32>
    %310 = vector.extract_strided_slice %307 {offsets = [0, 0], sizes = [2, 64], strides = [1, 1]} : vector<2x192xf32> to vector<2x64xf32>
    %311 = vector.extract_strided_slice %307 {offsets = [0, 64], sizes = [2, 64], strides = [1, 1]} : vector<2x192xf32> to vector<2x64xf32>
    %312 = vector.extract_strided_slice %307 {offsets = [0, 128], sizes = [2, 64], strides = [1, 1]} : vector<2x192xf32> to vector<2x64xf32>
    %313 = arith.mulf %311, %276 : vector<2x64xf32>
    %314 = arith.mulf %310, %309 : vector<2x64xf32>
    %315 = arith.addf %313, %314 : vector<2x64xf32>
    %316 = math.tanh %315 : vector<2x64xf32>
    %317 = arith.mulf %312, %316 : vector<2x64xf32>
    %c0_54 = arith.constant 0 : index
    %c0_55 = arith.constant 0 : index
    %318 = vector.load %arg4[%c0_54, %c0_55] : memref<1x64xf32, #tpu.memory_space<vmem>>, vector<1x64xf32>
    %319 = vector.broadcast %318 : vector<1x64xf32> to vector<2x64xf32>
    %320 = arith.mulf %317, %319 : vector<2x64xf32>
    %cst_56 = arith.constant dense<0.000000e+00> : vector<2xf32>
    %321 = vector.multi_reduction <add>, %320, %cst_56 [1] : vector<2x64xf32> to vector<2xf32>
    %322 = vector.shape_cast %321 : vector<2xf32> to vector<2x1xf32>
    %c0_57 = arith.constant 0 : index
    %c0_58 = arith.constant 0 : index
    %323 = vector.load %arg5[%c0_57, %c0_58] : memref<1x1xf32, #tpu.memory_space<vmem>>, vector<1x1xf32>
    %324 = vector.broadcast %323 : vector<1x1xf32> to vector<2x1xf32>
    %325 = arith.addf %322, %324 : vector<2x1xf32>
    %c0_59 = arith.constant 0 : index
    %c0_60 = arith.constant 0 : index
    %326 = vector.load %arg6[%c0_59, %c0_60] : memref<2x1xf32, #tpu.memory_space<vmem>>, vector<2x1xf32>
    tpu.vector_store %arg6[%c0_59, %c0_60], %325 {strides = array<i32>} : memref<2x1xf32, #tpu.memory_space<vmem>>, vector<2x1xf32>,
    return
  }
}

</mosaic_0001>

<bundles_post_ra>
// kernel: tpu_custom_call.1
= control target key start
LH: loop header
LB: loop body
LE: loop exit
PB: predicated region body
PF: predicated region fallthrough
CT: control target
= control target key end

     0   :  { %s3076_s0 = inlined_call_operand.hbm [shape: f32[8,2,256], index: 0, kind: input, shape index: {}]   ;;  %s3077_s1 = inlined_call_operand.hbm [shape: f32[64,256], index: 1, kind: input, shape index: {}]   ;;  %s3078_s2 = inlined_call_operand.hbm [shape: f32[128,256], index: 2, kind: input, shape index: {}]   ;;  %s3079_s3 = inlined_call_operand.vmem [shape: f32[1,256], index: 3, kind: input, shape index: {}]   ;;  %s3080_s4 = inlined_call_operand.vmem [shape: f32[1,64], index: 4, kind: input, shape index: {}]   ;;  %s3081_s5 = inlined_call_operand.<no memory space> [shape: f32[1,1], index: 5, kind: input, shape index: {}]   ;;  %s3082_s6 = inlined_call_operand.vmem [shape: f32[2,1], index: 6, kind: output, shape index: {}]  }
   0x1   :  { %v11_v0 = vstv %s3081_s5 }
   0x2   :  { %12 = vst [vmem:[#allocation2] sm:$0x1] %v11_v0 }
   0x3   :  { %13 = vsyncpa [#allocation4], 0 }
   0x4   :  { %14 = vsyncpa [#allocation6], 0  ;;  %s2241_s23 = smov [#allocation5]  }
   0x5   :  { %s32_s24 = sshll.u32 %s2241_s23, 4  ;;  %s33_s24 = int_to_ptr.vmem [resolvable:$true] %s32_s24 }
   0x6   :  { %s2185_s25 = scalar_lea.vmem %s33_s24, 2048  ;;  %p2190_p1 = scmp.lt.s32.totalorder %s33_s24, %s33_s24 }
   0x7   :  { %p2186_p0 = scmp.ne.s32.totalorder %s33_s24, %s2185_s25  ;;  %p2191_p2 = scmp.lt.s32.totalorder %s2185_s25, %s2185_s25 }
   0x9   :  { %p2192_p3 = por %p2191_p2, %p2190_p1 }
   0xb   :  { %p2193_p4 = pnand %p2192_p3, %p2186_p0 }
   0xd   :  { %2196 = shalt.err (!%p2193_p4)
}
   0xe   :  { %s2242_s26 = smov 256   ;;  %s2243_s27 = smov 16  }
   0xf   :  { %38 = dma.hbm_to_vmem [thread:$0]  %s3077_s1, 2048, %s33_s24, [#allocation6], %s2242_s26, %s2242_s26, %s2243_s27  }
  0x10   :  { %s2244_s5 = smov [#allocation3]  }
  0x11   :  { %s20_s30 = sshll.u32 %s2244_s5, 4  ;;  %s21_s30 = int_to_ptr.vmem [resolvable:$true] %s20_s30 }
  0x12   :  { %s2205_s7 = scalar_lea.vmem %s21_s30, 512  ;;  %p2210_p6 = scmp.lt.s32.totalorder %s21_s30, %s21_s30 }
  0x13   :  { %p2206_p5 = scmp.ne.s32.totalorder %s21_s30, %s2205_s7  ;;  %p2211_p7 = scmp.lt.s32.totalorder %s2205_s7, %s2205_s7 }
  0x15   :  { %p2212_p8 = por %p2211_p7, %p2210_p6 }
  0x17   :  { %p2213_p9 = pnand %p2212_p8, %p2206_p5 }
  0x19   :  { %2216 = shalt.err (!%p2213_p9)
}
  0x1a   :  { %s2245_s8 = smov 64   ;;  %s2246_s9 = smov 4  }
  0x1b   :  { %26 = dma.hbm_to_vmem [thread:$0]  %s3076_s0, 512, %s21_s30, [#allocation4], %s2245_s8, %s2245_s8, %s2246_s9  }
  0x1c   :  { %s2247_s12 = smov [#allocation7]  }
  0x1d   :  { %s44_s1 = sshll.u32 %s2247_s12, 4  ;;  %s45_s1 = int_to_ptr.vmem [resolvable:$true] %s44_s1 }
  0x1e   :  { %s2225_s13 = scalar_lea.vmem %s45_s1, 4096  ;;  %p2230_p11 = scmp.lt.s32.totalorder %s45_s1, %s45_s1 }
  0x1f   :  { %p2226_p10 = scmp.ne.s32.totalorder %s45_s1, %s2225_s13  ;;  %p2231_p12 = scmp.lt.s32.totalorder %s2225_s13, %s2225_s13 }
  0x21   :  { %p2232_p13 = por %p2231_p12, %p2230_p11 }
  0x23   :  { %p2233_p0 = pnand %p2232_p13, %p2226_p10 }
  0x25   :  { %2236 = shalt.err (!%p2233_p0)
}
  0x26   :  { %50 = dma.hbm_to_vmem [thread:$0]  %s3078_s2, 4096, %s45_s1, [#allocation6], %s2242_s26, %s2242_s26, %s2243_s27  }
  0x27   :  { %2237 = dma.done.wait [#allocation4], 512  }
  0x28   :  { %2238 = vsyncadd [#allocation4], 4294966784 }
  0x29   :  { %2239 = dma.done.wait [#allocation6], 6144  }
  0x2a   :  { %2240 = vsyncadd [#allocation6], 4294961152  ;;  %v3083_v1 = vmov 0.0   ;;  %v2301_v2 = vld [vmem:[#allocation5 + $0x78] sm:$0xff]  ;;  %v2303_v3 = vld [vmem:[#allocation5 + $0x70] sm:$0xff]  ;;  %v116_v18 = vlaneseq  ;;  %vm127_vm0 = vcmask 523264  }
  0x2b   :  { %195 = vmatprep.mubr.f32.mxu1 %v3083_v1  ;;  %413 = vmatprep.mubr.f32.mxu0 %v3083_v1  ;;  %v2305_v4 = vld [vmem:[#allocation5 + $0x68] sm:$0xff]  ;;  %v2308_v5 = vld [vmem:[#allocation5 + $0x60] sm:$0xff]  ;;  %v2312_v6 = vld [vmem:[#allocation5 + $0x58] sm:$0xff]  ;;  %v2249_v19 = vmov 1983009808   ;;  %vm1906_vm1 = vcmask 517120  }
  0x2c   :  { %147 = vmatprep.subr.mxu1 %v2301_v2  ;;  %365 = vmatprep.subr.mxu0 %v2301_v2  ;;  %v2316_v7 = vld [vmem:[#allocation5 + $0x50] sm:$0xff]  ;;  %v2320_v8 = vld [vmem:[#allocation5 + $0x48] sm:$0xff]  ;;  %v2324_v9 = vld [vmem:[#allocation5 + $0x40] sm:$0xff]  ;;  %v206_v20 = vunpack.c.l.s4 %v2249_v19  ;;  %v2367_v21 = vshrl.u32 %v116_v18, 7  ;;  %vm1918_vm2 = vcmask 1024  }
  0x2d   :  { %148 = vmatpush1.msra.mxu1 %v2303_v3  ;;  %366 = vmatpush1.msra.mxu0 %v2303_v3  ;;  %v2328_v10 = vld [vmem:[#allocation5 + $0x38] sm:$0xff]  ;;  %v2332_v11 = vld [vmem:[#allocation5 + $0x30] sm:$0xff]  ;;  %v2336_v12 = vld [vmem:[#allocation5 + $0x28] sm:$0xff] }
  0x2e   :  { %149 = vmatprep.subr.mxu1 %v2305_v4  ;;  %367 = vmatprep.subr.mxu0 %v2305_v4  ;;  %v2340_v13 = vld [vmem:[#allocation5 + $0x20] sm:$0xff]  ;;  %v2344_v14 = vld [vmem:[#allocation5 + $0x18] sm:$0xff]  ;;  %v2348_v15 = vld [vmem:[#allocation5 + $0x10] sm:$0xff]  ;;  %v207_v22 = vunpack.c.0.s8 %v206_v20 }
  0x2f   :  { %150 = vmatpush1.msra.mxu1 %v2308_v5  ;;  %368 = vmatpush1.msra.mxu0 %v2308_v5  ;;  %3100 = vst [vmem:[#allocation10_spill] sm:$0xff] %v2348_v15  ;;  %v2352_v16 = vld [vmem:[#allocation5 + $0x8] sm:$0xff]  ;;  %v2356_v17 = vld [vmem:[#allocation5] sm:$0xff]  ;;  %v2378_v38 = vld [vmem:[#allocation7 + $0xf8] sm:$0xff] }
  0x30   :  { %151 = vmatprep.subr.mxu1 %v2312_v6  ;;  %369 = vmatprep.subr.mxu0 %v2312_v6  ;;  %3101 = vst [vmem:[#allocation11_spill] sm:$0xff] %v2352_v16  ;;  %3102 = vst [vmem:[#allocation12_spill] sm:$0xff] %v2356_v17  ;;  %v2370_v24 = vsub.s32 %v207_v22, %v2367_v21  ;;  %v126_v27 = vld [vmem:[#allocation3] sm:$0xf]  ;;  %v2380_v39 = vld [vmem:[#allocation7 + $0xf0] sm:$0xff] }
  0x31   :  { %152 = vmatpush1.msra.mxu1 %v2316_v7  ;;  %370 = vmatpush1.msra.mxu0 %v2316_v7  ;;  %3104 = vst [vmem:[#allocation14_spill] sm:$0xff] %v2378_v38  ;;  %v2382_v40 = vld [vmem:[#allocation7 + $0xe8] sm:$0xff]  ;;  %v2385_v41 = vld [vmem:[#allocation7 + $0xe0] sm:$0xff]  ;;  %v2389_v42 = vld [vmem:[#allocation7 + $0xd8] sm:$0xff] }
  0x32   :  { %153 = vmatprep.subr.mxu1 %v2320_v8  ;;  %371 = vmatprep.subr.mxu0 %v2320_v8  ;;  %3103 = vst [vmem:[#allocation13_spill] sm:$0xff] %v2370_v24  ;;  %v2392_v43 = vld [vmem:[#allocation7 + $0xd0] sm:$0xff]  ;;  %v2395_v44 = vld [vmem:[#allocation7 + $0xc8] sm:$0xff]  ;;  %v2398_v45 = vld [vmem:[#allocation7 + $0xc0] sm:$0xff] }
  0x33   :  { %154 = vmatpush1.msra.mxu1 %v2324_v9  ;;  %372 = vmatpush1.msra.mxu0 %v2324_v9  ;;  %v2401_v46 = vld [vmem:[#allocation7 + $0xb8] sm:$0xff]  ;;  %v2404_v47 = vld [vmem:[#allocation7 + $0xb0] sm:$0xff]  ;;  %v2407_v48 = vld [vmem:[#allocation7 + $0xa8] sm:$0xff] }
  0x34   :  { %155 = vmatprep.subr.mxu1 %v2328_v10  ;;  %373 = vmatprep.subr.mxu0 %v2328_v10  ;;  %v2410_v49 = vld [vmem:[#allocation7 + $0xa0] sm:$0xff]  ;;  %v2413_v50 = vld [vmem:[#allocation7 + $0x98] sm:$0xff]  ;;  %v2416_v51 = vld [vmem:[#allocation7 + $0x90] sm:$0xff] }
  0x35   :  { %156 = vmatpush1.msra.mxu1 %v2332_v11  ;;  %374 = vmatpush1.msra.mxu0 %v2332_v11  ;;  %v2419_v52 = vld [vmem:[#allocation7 + $0x88] sm:$0xff]  ;;  %v2422_v53 = vld [vmem:[#allocation7 + $0x80] sm:$0xff]  ;;  %v2425_v54 = vld [vmem:[#allocation7 + $0x78] sm:$0xff] }
  0x36   :  { %157 = vmatprep.subr.mxu1 %v2336_v12  ;;  %375 = vmatprep.subr.mxu0 %v2336_v12  ;;  %v2428_v55 = vld [vmem:[#allocation7 + $0x70] sm:$0xff]  ;;  %v2431_v56 = vld [vmem:[#allocation7 + $0x68] sm:$0xff]  ;;  %v2434_v57 = vld [vmem:[#allocation7 + $0x60] sm:$0xff] }
  0x37   :  { %158 = vmatpush1.msra.mxu1 %v2340_v13  ;;  %376 = vmatpush1.msra.mxu0 %v2340_v13  ;;  %v2437_v58 = vld [vmem:[#allocation7 + $0x58] sm:$0xff]  ;;  %v2440_v59 = vld [vmem:[#allocation7 + $0x50] sm:$0xff]  ;;  %v2443_v60 = vld [vmem:[#allocation7 + $0x48] sm:$0xff] }
  0x38   :  { %159 = vmatprep.subr.mxu1 %v2344_v14  ;;  %377 = vmatprep.subr.mxu0 %v2344_v14  ;;  %v2446_v61 = vld [vmem:[#allocation7 + $0x40] sm:$0xff]  ;;  %v2449_v62 = vld [vmem:[#allocation7 + $0x38] sm:$0xff]  ;;  %v2452_v63 = vld [vmem:[#allocation7 + $0x30] sm:$0xff] }
  0x39   :  { %160 = vmatpush1.msra.mxu1 %v2348_v15  ;;  %378 = vmatpush1.msra.mxu0 %v2348_v15  ;;  %v2455_v0 = vld [vmem:[#allocation7 + $0x28] sm:$0xff]  ;;  %v2458_v18 = vld [vmem:[#allocation7 + $0x20] sm:$0xff]  ;;  %v2461_v19 = vld [vmem:[#allocation7 + $0x18] sm:$0xff] }
  0x3a   :  { %161 = vmatprep.subr.mxu1 %v2352_v16  ;;  %379 = vmatprep.subr.mxu0 %v2352_v16  ;;  %v2464_v20 = vld [vmem:[#allocation7 + $0x10] sm:$0xff] }
  0x3b   :  { %162 = vmatpush1.msra.mxu1 %v2356_v17  ;;  %380 = vmatpush1.msra.mxu0 %v2356_v17 }
  0x3c   :  { %196 = vmatmul.mubr.f32.vlgmr.msra.gmra.mxu1 %v3083_v1  ;;  %243 = vmatprep.subr.mxu1 %v2378_v38 }
  0x3d   :  { %307 = vmatprep.mubr.f32.mxu1 %v3083_v1  ;;  %465 = vmatprep.subr.mxu0 %v2378_v38 }
  0x3e   :  { %244 = vmatpush1.msra.mxu1 %v2380_v39 }
  0x3f   :  { %245 = vmatprep.subr.mxu1 %v2382_v40 }
  0x40   :  { %246 = vmatpush1.msra.mxu1 %v2385_v41 }
  0x41   :  { %247 = vmatprep.subr.mxu1 %v2389_v42 }
  0x42   :  { %248 = vmatpush1.msra.mxu1 %v2392_v43 }
  0x43   :  { %249 = vmatprep.subr.mxu1 %v2395_v44 }
  0x44   :  { %250 = vmatpush1.msra.mxu1 %v2398_v45 }
  0x45   :  { %251 = vmatprep.subr.mxu1 %v2401_v46 }
  0x46   :  { %252 = vmatpush1.msra.mxu1 %v2404_v47 }
  0x47   :  { %253 = vmatprep.subr.mxu1 %v2407_v48 }
  0x48   :  { %254 = vmatpush1.msra.mxu1 %v2410_v49 }
  0x49   :  { %255 = vmatprep.subr.mxu1 %v2413_v50 }
  0x4a   :  { %256 = vmatpush1.msra.mxu1 %v2416_v51 }
  0x4b   :  { %257 = vmatprep.subr.mxu1 %v2419_v52 }
  0x4c   :  { %258 = vmatpush1.msra.mxu1 %v2422_v53 }
  0x4d   :  { %259 = vmatprep.subr.mxu1 %v2425_v54 }
  0x4e   :  { %260 = vmatpush1.msra.mxu1 %v2428_v55 }
  0x4f   :  { %261 = vmatprep.subr.mxu1 %v2431_v56 }
  0x50   :  { %262 = vmatpush1.msra.mxu1 %v2434_v57 }
  0x51   :  { %263 = vmatprep.subr.mxu1 %v2437_v58 }
  0x52   :  { %264 = vmatpush1.msra.mxu1 %v2440_v59 }
  0x53   :  { %265 = vmatprep.subr.mxu1 %v2443_v60 }
  0x54   :  { %266 = vmatpush1.msra.mxu1 %v2446_v61 }
  0x55   :  { %267 = vmatprep.subr.mxu1 %v2449_v62 }
  0x56   :  { %268 = vmatpush1.msra.mxu1 %v2452_v63 }
  0x57   :  { %269 = vmatprep.subr.mxu1 %v2455_v0 }
  0x58   :  { %270 = vmatpush1.msra.mxu1 %v2458_v18 }
  0x59   :  { %271 = vmatprep.subr.mxu1 %v2461_v19 }
  0x5a   :  { %272 = vmatpush1.msra.mxu1 %v2464_v20 }
  0xfc   :  { %v197_v23 = vpop.f32.mrf.mxu1 }
  0xfe   :  { %v199_v25 = vpop.f32.mrf.mxu1 }
  0xff   :  { %v204_v26 = vcombine.low %v197_v23, %v199_v25 }
 0x101   :  { %v211_v28 = vrot.slane %v204_v26, %v2370_v24  ;;  %v2473_v26 = vld [vmem:[#allocation7 + $0x8] sm:$0xff] }
 0x102   :  { %273 = vmatprep.subr.mxu1 %v2473_v26 }
 0x103   :  { %v213_v29 = vadd.f32 %v211_v28, %v126_v27  ;;  %v2476_v27 = vld [vmem:[#allocation7] sm:$0xff] }
 0x104   :  { %274 = vmatpush1.msra.mxu1 %v2476_v27 }
 0x105   :  { %221 = vrot.lane.b32.xlu0 %v213_v29, %s2245_s8  ;;  %v1926_v30 = vmul.f32 -1.442695, %v213_v29  ;;  %587 = vmatprep.subr.mxu1 %v2301_v2 }
 0x107   :  { %1969 = vpow2.f32 %v1926_v30 }
 0x114   :  { %v1970_v31 = vpop.eup %1969 }
 0x115   :  { %v217_v32 = vadd.f32 1.0, %v1970_v31 }
 0x117   :  { %1971 = vrcp.f32 %v217_v32  ;;  %v122_v32 = vsub.s32 1, %v2367_v21 }
 0x124   :  { %v2374_v35 = vpop.eup %1971 }
 0x125   :  { %v226_v22 = vmul.f32 0.0, %v2374_v35  ;;  %v235_v29 = vrot.slane %v2374_v35, 2 }
 0x177   :  { %v222_v33 = vpop.permute.xlu0 %221 }
 0x178   :  { %v223_v34 = vrot.slane %v222_v33, 2  ;;  %v114_v33 = vld [vmem:[%s3079_s3] sm:$0x3] }
 0x17a   :  { %1973 = vtanh.f32 %v223_v34  ;;  %v2538_v34 = vrot.slane %v114_v33, %v122_v32  ;;  %v118_v32 = vsub.s32 0, %v2367_v21 }
 0x17c   :  { %3105 = vst [vmem:[#allocation15_spill] sm:$0xff] %v2538_v34 }
 0x187   :  { %v1974_v36 = vpop.eup %1973 }
 0x188   :  { %v227_v37 = vmul.f32 %v1974_v36, %v2374_v35 }
 0x18a   :  { %229 = vrot.lane.b32.xlu0 %v227_v37, %s2245_s8 }
 0x1fc   :  { %v230_v23 = vpop.permute.xlu0 %229 }
 0x1fd   :  { %v2470_v25 = vadd.f32 %v230_v23, %v226_v22 }
 0x1ff   :  { %1975 = vtanh.f32 %v2470_v25 }
 0x20c   :  { %v1976_v28 = vpop.eup %1975 }
 0x20d   :  { %238 = vrot.lane.b32.xlu1 %v1976_v28, %s2245_s8 }
 0x27f   :  { %v239_v30 = vpop.permute.xlu1 %238 }
 0x280   :  { %v241_v31 = vmul.f32 %v239_v30, %v235_v29  ;;  %v345_v29 = vld [vmem:[#allocation3 + $0x4] sm:$0xf] }
 0x282   :  { %1927 = vmatmul.mubr.msk.f32.vlgmr.msra.gmra.mxu1 %vm127_vm0, %v241_v31  ;;  %1930 = vmatmul.mubr.msk.f32.vlgmr.msra.gmra.mxu0 %vm127_vm0, %v241_v31 }
 0x283   :  { %588 = vmatpush1.msra.mxu1 %v2303_v3  ;;  %635 = vmatprep.mubr.f32.mxu1 %v3083_v1 }
 0x284   :  { %589 = vmatprep.subr.mxu1 %v2305_v4  ;;  %466 = vmatpush1.msra.mxu0 %v2380_v39 }
 0x285   :  { %590 = vmatpush1.msra.mxu1 %v2308_v5  ;;  %467 = vmatprep.subr.mxu0 %v2382_v40 }
 0x286   :  { %591 = vmatprep.subr.mxu1 %v2312_v6  ;;  %468 = vmatpush1.msra.mxu0 %v2385_v41 }
 0x287   :  { %592 = vmatpush1.msra.mxu1 %v2316_v7  ;;  %469 = vmatprep.subr.mxu0 %v2389_v42 }
 0x288   :  { %593 = vmatprep.subr.mxu1 %v2320_v8  ;;  %470 = vmatpush1.msra.mxu0 %v2392_v43 }
 0x289   :  { %594 = vmatpush1.msra.mxu1 %v2324_v9  ;;  %471 = vmatprep.subr.mxu0 %v2395_v44 }
 0x28a   :  { %595 = vmatprep.subr.mxu1 %v2328_v10  ;;  %472 = vmatpush1.msra.mxu0 %v2398_v45 }
 0x28b   :  { %596 = vmatpush1.msra.mxu1 %v2332_v11  ;;  %473 = vmatprep.subr.mxu0 %v2401_v46 }
 0x28c   :  { %597 = vmatprep.subr.mxu1 %v2336_v12  ;;  %474 = vmatpush1.msra.mxu0 %v2404_v47 }
 0x28d   :  { %598 = vmatpush1.msra.mxu1 %v2340_v13  ;;  %475 = vmatprep.subr.mxu0 %v2407_v48 }
 0x28e   :  { %599 = vmatprep.subr.mxu1 %v2344_v14  ;;  %476 = vmatpush1.msra.mxu0 %v2410_v49 }
 0x28f   :  { %600 = vmatpush1.msra.mxu1 %v2348_v15  ;;  %477 = vmatprep.subr.mxu0 %v2413_v50 }
 0x290   :  { %601 = vmatprep.subr.mxu1 %v2352_v16  ;;  %478 = vmatpush1.msra.mxu0 %v2416_v51 }
 0x291   :  { %602 = vmatpush1.msra.mxu1 %v2356_v17  ;;  %479 = vmatprep.subr.mxu0 %v2419_v52 }
 0x292   :  { %480 = vmatpush1.msra.mxu0 %v2422_v53  ;;  %529 = vmatprep.mubr.f32.mxu0 %v3083_v1 }
 0x293   :  { %481 = vmatprep.subr.mxu0 %v2425_v54  ;;  %687 = vmatprep.subr.mxu1 %v2378_v38  ;;  %v2545_v38 = vrot.slane %v114_v33, %v118_v32 }
 0x294   :  { %482 = vmatpush1.msra.mxu0 %v2428_v55 }
 0x295   :  { %483 = vmatprep.subr.mxu0 %v2431_v56 }
 0x296   :  { %484 = vmatpush1.msra.mxu0 %v2434_v57 }
 0x297   :  { %485 = vmatprep.subr.mxu0 %v2437_v58 }
 0x298   :  { %486 = vmatpush1.msra.mxu0 %v2440_v59 }
 0x299   :  { %487 = vmatprep.subr.mxu0 %v2443_v60 }
 0x29a   :  { %488 = vmatpush1.msra.mxu0 %v2446_v61 }
 0x29b   :  { %489 = vmatprep.subr.mxu0 %v2449_v62 }
 0x29c   :  { %490 = vmatpush1.msra.mxu0 %v2452_v63 }
 0x29d   :  { %491 = vmatprep.subr.mxu0 %v2455_v0 }
 0x29e   :  { %492 = vmatpush1.msra.mxu0 %v2458_v18 }
 0x29f   :  { %493 = vmatprep.subr.mxu0 %v2461_v19 }
 0x2a0   :  { %494 = vmatpush1.msra.mxu0 %v2464_v20 }
 0x2a1   :  { %495 = vmatprep.subr.mxu0 %v2473_v26 }
 0x2a2   :  { %496 = vmatpush1.msra.mxu0 %v2476_v27 }
 0x2a3   :  { %809 = vmatprep.subr.mxu0 %v2301_v2 }
 0x342   :  { %v309_v35 = vpop.f32.mrf.mxu1  ;;  %v415_v36 = vpop.f32.mrf.mxu0 }
 0x343   :  { %v310_v17 = vadd.f32 %v309_v35, %v2545_v38 }
 0x344   :  { %v311_v37 = vpop.f32.mrf.mxu1  ;;  %v417_v22 = vpop.f32.mrf.mxu0 }
 0x345   :  { %v312_v23 = vadd.f32 %v311_v37, %v2538_v34  ;;  %v422_v28 = vcombine.low %v415_v36, %v417_v22  ;;  %v1928_v16 = vmul.f32 -1.442695, %v310_v17 }
 0x347   :  { %v429_v30 = vrot.slane %v422_v28, %v2370_v24  ;;  %1977 = vtanh.f32 %v312_v23 }
 0x348   :  { %1979 = vpow2.f32 %v1928_v16 }
 0x349   :  { %v431_v31 = vadd.f32 %v429_v30, %v345_v29 }
 0x34b   :  { %439 = vrot.lane.b32.xlu0 %v431_v31, %s2245_s8  ;;  %v1931_v37 = vmul.f32 -1.442695, %v431_v31 }
 0x34d   :  { %1981 = vpow2.f32 %v1931_v37 }
 0x354   :  { %v1978_v1 = vpop.eup %1977 }
 0x355   :  { %329 = vrot.lane.b32.xlu1 %v1978_v1, %s2245_s8  ;;  %v1980_v36 = vpop.eup %1979 }
 0x356   :  { %v320_v22 = vadd.f32 1.0, %v1980_v36 }
 0x358   :  { %1983 = vrcp.f32 %v320_v22 }
 0x35a   :  { %v1982_v28 = vpop.eup %1981 }
 0x35b   :  { %v435_v29 = vadd.f32 1.0, %v1982_v28  ;;  %v1929_v28 = vmul.f32 -1.442695, %v312_v23 }
 0x35d   :  { %1985 = vrcp.f32 %v435_v29 }
 0x365   :  { %v1984_v1 = vpop.eup %1983 }
 0x366   :  { %v327_v16 = vmul.f32 0.0, %v1984_v1 }
 0x36a   :  { %v1986_v33 = vpop.eup %1985 }
 0x36b   :  { %v444_v37 = vmul.f32 %v1986_v33, %v2470_v25  ;;  %v453_v25 = vrot.slane %v1986_v33, 2 }
 0x3bd   :  { %v440_v30 = vpop.permute.xlu0 %439 }
 0x3be   :  { %v441_v34 = vrot.slane %v440_v30, 2 }
 0x3c0   :  { %1987 = vtanh.f32 %v441_v34 }
 0x3c7   :  { %v330_v24 = vpop.permute.xlu1 %329 }
 0x3c8   :  { %v332_v21 = vmul.f32 %v1984_v1, %v330_v24 }
 0x3ca   :  { %334 = vrot.lane.b32.xlu1 %v332_v21, %s2245_s8 }
 0x3cd   :  { %v1988_v35 = vpop.eup %1987 }
 0x3ce   :  { %v445_v17 = vmul.f32 %v1988_v35, %v1986_v33 }
 0x3d0   :  { %447 = vrot.lane.b32.xlu0 %v445_v17, %s2245_s8 }
 0x43c   :  { %v335_v31 = vpop.permute.xlu1 %334 }
 0x43d   :  { %v2550_v32 = vadd.f32 %v335_v31, %v327_v16  ;;  %v3106_v31 = vmov 0.0  }
 0x43f   :  { %1989 = vtanh.f32 %v2550_v32 }
 0x442   :  { %v448_v36 = vpop.permute.xlu0 %447 }
 0x443   :  { %v2554_v34 = vadd.f32 %v448_v36, %v444_v37  ;;  %v3107_v37 = vld [vmem:[#allocation11_spill] sm:$0xff]  ;;  %v3108_v36 = vld [vmem:[#allocation12_spill] sm:$0xff] }
 0x445   :  { %1991 = vtanh.f32 %v2554_v34 }
 0x446   :  { %1993 = vpow2.f32 %v1929_v28 }
 0x44c   :  { %v1990_v24 = vpop.eup %1989 }
 0x44d   :  { %340 = vrot.lane.b32.xlu1 %v1990_v24, %s2245_s8  ;;  %v3109_v24 = vld [vmem:[#allocation14_spill] sm:$0xff] }
 0x452   :  { %v1992_v22 = vpop.eup %1991 }
 0x453   :  { %456 = vrot.lane.b32.xlu0 %v1992_v22, %s2245_s8  ;;  %v1994_v29 = vpop.eup %1993 }
 0x454   :  { %v321_v30 = vadd.f32 1.0, %v1994_v29 }
 0x456   :  { %1995 = vrcp.f32 %v321_v30  ;;  %v567_v30 = vld [vmem:[#allocation3 + $0x8] sm:$0xf] }
 0x463   :  { %v1996_v1 = vpop.eup %1995 }
 0x4bf   :  { %v341_v21 = vpop.permute.xlu1 %340 }
 0x4c0   :  { %v343_v35 = vmul.f32 %v1996_v1, %v341_v21  ;;  %v3110_v1 = vld [vmem:[#allocation13_spill] sm:$0xff] }
 0x4c2   :  { %461 = vrot.lane.b32.xlu1 %v343_v35, %s2245_s8 }
 0x4c5   :  { %v457_v17 = vpop.permute.xlu0 %456 }
 0x4c6   :  { %v459_v16 = vmul.f32 %v457_v17, %v453_v25 }
 0x4c8   :  { %1934 = vmatmul.mubr.msk.f32.vlgmr.msra.gmra.mxu1 %vm127_vm0, %v459_v16 }
 0x4c9   :  { %688 = vmatpush1.msra.mxu1 %v2380_v39  ;;  %751 = vmatprep.mubr.f32.mxu1 %v3106_v31 }
 0x4ca   :  { %689 = vmatprep.subr.mxu1 %v2382_v40 }
 0x4cb   :  { %690 = vmatpush1.msra.mxu1 %v2385_v41 }
 0x4cc   :  { %691 = vmatprep.subr.mxu1 %v2389_v42 }
 0x4cd   :  { %692 = vmatpush1.msra.mxu1 %v2392_v43 }
 0x4ce   :  { %693 = vmatprep.subr.mxu1 %v2395_v44 }
 0x4cf   :  { %694 = vmatpush1.msra.mxu1 %v2398_v45 }
 0x4d0   :  { %695 = vmatprep.subr.mxu1 %v2401_v46 }
 0x4d1   :  { %696 = vmatpush1.msra.mxu1 %v2404_v47 }
 0x4d2   :  { %697 = vmatprep.subr.mxu1 %v2407_v48 }
 0x4d3   :  { %698 = vmatpush1.msra.mxu1 %v2410_v49 }
 0x4d4   :  { %699 = vmatprep.subr.mxu1 %v2413_v50 }
 0x4d5   :  { %700 = vmatpush1.msra.mxu1 %v2416_v51 }
 0x4d6   :  { %701 = vmatprep.subr.mxu1 %v2419_v52 }
 0x4d7   :  { %702 = vmatpush1.msra.mxu1 %v2422_v53 }
 0x4d8   :  { %703 = vmatprep.subr.mxu1 %v2425_v54 }
 0x4d9   :  { %704 = vmatpush1.msra.mxu1 %v2428_v55 }
 0x4da   :  { %705 = vmatprep.subr.mxu1 %v2431_v56 }
 0x4db   :  { %706 = vmatpush1.msra.mxu1 %v2434_v57 }
 0x4dc   :  { %707 = vmatprep.subr.mxu1 %v2437_v58 }
 0x4dd   :  { %708 = vmatpush1.msra.mxu1 %v2440_v59 }
 0x4de   :  { %709 = vmatprep.subr.mxu1 %v2443_v60 }
 0x4df   :  { %710 = vmatpush1.msra.mxu1 %v2446_v61 }
 0x4e0   :  { %711 = vmatprep.subr.mxu1 %v2449_v62 }
 0x4e1   :  { %712 = vmatpush1.msra.mxu1 %v2452_v63 }
 0x4e2   :  { %713 = vmatprep.subr.mxu1 %v2455_v0 }
 0x4e3   :  { %714 = vmatpush1.msra.mxu1 %v2458_v18 }
 0x4e4   :  { %715 = vmatprep.subr.mxu1 %v2461_v19 }
 0x4e5   :  { %716 = vmatpush1.msra.mxu1 %v2464_v20 }
 0x4e6   :  { %717 = vmatprep.subr.mxu1 %v2473_v26 }
 0x4e7   :  { %718 = vmatpush1.msra.mxu1 %v2476_v27 }
 0x4e8   :  { %1031 = vmatprep.subr.mxu1 %v2301_v2 }
 0x534   :  { %v462_v23 = vpop.permute.xlu1 %461 }
 0x535   :  { %v464_v33 = vsel %vm127_vm0, %v459_v16, %v462_v23  ;;  %v3111_v23 = vld [vmem:[#allocation15_spill] sm:$0xff] }
 0x536   :  { %530 = vmatmul.mubr.f32.vlgmr.msra.gmra.mxu0 %v464_v33 }
 0x537   :  { %810 = vmatpush1.msra.mxu0 %v2303_v3  ;;  %857 = vmatprep.mubr.f32.mxu0 %v3106_v31 }
 0x538   :  { %811 = vmatprep.subr.mxu0 %v2305_v4 }
 0x539   :  { %812 = vmatpush1.msra.mxu0 %v2308_v5 }
 0x53a   :  { %813 = vmatprep.subr.mxu0 %v2312_v6 }
 0x53b   :  { %814 = vmatpush1.msra.mxu0 %v2316_v7 }
 0x53c   :  { %815 = vmatprep.subr.mxu0 %v2320_v8 }
 0x53d   :  { %816 = vmatpush1.msra.mxu0 %v2324_v9 }
 0x53e   :  { %817 = vmatprep.subr.mxu0 %v2328_v10 }
 0x53f   :  { %818 = vmatpush1.msra.mxu0 %v2332_v11 }
 0x540   :  { %819 = vmatprep.subr.mxu0 %v2336_v12 }
 0x541   :  { %820 = vmatpush1.msra.mxu0 %v2340_v13 }
 0x542   :  { %821 = vmatprep.subr.mxu0 %v2344_v14 }
 0x543   :  { %822 = vmatpush1.msra.mxu0 %v2348_v15 }
 0x544   :  { %823 = vmatprep.subr.mxu0 %v3107_v37 }
 0x545   :  { %824 = vmatpush1.msra.mxu0 %v3108_v36 }
 0x546   :  { %909 = vmatprep.subr.mxu0 %v3109_v24 }
 0x588   :  { %v637_v22 = vpop.f32.mrf.mxu1 }
 0x58a   :  { %v639_v28 = vpop.f32.mrf.mxu1 }
 0x58b   :  { %v644_v29 = vcombine.low %v637_v22, %v639_v28 }
 0x58d   :  { %v651_v21 = vrot.slane %v644_v29, %v3110_v1 }
 0x58f   :  { %v653_v35 = vadd.f32 %v651_v21, %v567_v30 }
 0x591   :  { %661 = vrot.lane.b32.xlu1 %v653_v35, %s2245_s8  ;;  %v1935_v25 = vmul.f32 -1.442695, %v653_v35 }
 0x593   :  { %1997 = vpow2.f32 %v1935_v25 }
 0x5a0   :  { %v1998_v36 = vpop.eup %1997 }
 0x5a1   :  { %v657_v24 = vadd.f32 1.0, %v1998_v36 }
 0x5f6   :  { %v531_v17 = vpop.f32.mrf.mxu0 }
 0x5f7   :  { %v532_v21 = vadd.f32 %v531_v17, %v2545_v38 }
 0x5f8   :  { %v533_v16 = vpop.f32.mrf.mxu0 }
 0x5f9   :  { %v2615_v33 = vadd.f32 %v533_v16, %v3111_v23  ;;  %v1932_v35 = vmul.f32 -1.442695, %v532_v21 }
 0x5fb   :  { %1999 = vtanh.f32 %v2615_v33 }
 0x5fc   :  { %2001 = vrcp.f32 %v657_v24 }
 0x603   :  { %v662_v37 = vpop.permute.xlu1 %661 }
 0x604   :  { %v663_v15 = vrot.slane %v662_v37, 2 }
 0x606   :  { %2003 = vtanh.f32 %v663_v15 }
 0x607   :  { %2005 = vpow2.f32 %v1932_v35 }
 0x608   :  { %v2000_v22 = vpop.eup %1999 }
 0x609   :  { %551 = vrot.lane.b32.xlu0 %v2000_v22, %s2245_s8  ;;  %v2002_v28 = vpop.eup %2001 }
 0x60a   :  { %v666_v15 = vmul.f32 %v2002_v28, %v2554_v34  ;;  %v675_v35 = vrot.slane %v2002_v28, 2 }
 0x613   :  { %v2004_v29 = vpop.eup %2003 }
 0x614   :  { %v667_v30 = vmul.f32 %v2004_v29, %v2002_v28  ;;  %v2006_v25 = vpop.eup %2005 }
 0x615   :  { %v542_v16 = vadd.f32 1.0, %v2006_v25 }
 0x616   :  { %669 = vrot.lane.b32.xlu1 %v667_v30, %s2245_s8 }
 0x617   :  { %2007 = vrcp.f32 %v542_v16 }
 0x624   :  { %v2008_v36 = vpop.eup %2007 }
 0x625   :  { %v549_v17 = vmul.f32 %v2008_v36, %v2550_v32  ;;  %v1933_v32 = vmul.f32 -1.442695, %v2615_v33 }
 0x67b   :  { %v552_v23 = vpop.permute.xlu0 %551 }
 0x67c   :  { %v554_v37 = vmul.f32 %v2008_v36, %v552_v23 }
 0x67e   :  { %556 = vrot.lane.b32.xlu0 %v554_v37, %s2245_s8 }
 0x688   :  { %v670_v24 = vpop.permute.xlu1 %669 }
 0x689   :  { %v2623_v22 = vadd.f32 %v670_v24, %v666_v15 }
 0x68b   :  { %2009 = vtanh.f32 %v2623_v22 }
 0x698   :  { %v2010_v29 = vpop.eup %2009 }
 0x699   :  { %678 = vrot.lane.b32.xlu1 %v2010_v29, %s2245_s8 }
 0x6f0   :  { %v557_v30 = vpop.permute.xlu0 %556 }
 0x6f1   :  { %v2628_v21 = vadd.f32 %v557_v30, %v549_v17  ;;  %v789_v30 = vld [vmem:[#allocation3 + $0xc] sm:$0xf] }
 0x6f3   :  { %2011 = vtanh.f32 %v2628_v21 }
 0x6f4   :  { %2013 = vpow2.f32 %v1933_v32 }
 0x700   :  { %v2012_v23 = vpop.eup %2011 }
 0x701   :  { %562 = vrot.lane.b32.xlu0 %v2012_v23, %s2245_s8  ;;  %v2014_v28 = vpop.eup %2013 }
 0x702   :  { %v543_v16 = vadd.f32 1.0, %v2014_v28  ;;  %v3116_v28 = vld [vmem:[#allocation15_spill] sm:$0xff] }
 0x704   :  { %2015 = vrcp.f32 %v543_v16 }
 0x70b   :  { %v679_v34 = vpop.permute.xlu1 %678 }
 0x70c   :  { %v681_v25 = vmul.f32 %v679_v34, %v675_v35 }
 0x70e   :  { %1938 = vmatmul.mubr.msk.f32.vlgmr.msra.gmra.mxu0 %vm127_vm0, %v681_v25 }
 0x70f   :  { %910 = vmatpush1.msra.mxu0 %v2380_v39  ;;  %973 = vmatprep.mubr.f32.mxu0 %v3106_v31 }
 0x710   :  { %911 = vmatprep.subr.mxu0 %v2382_v40 }
 0x711   :  { %912 = vmatpush1.msra.mxu0 %v2385_v41  ;;  %v2016_v36 = vpop.eup %2015 }
 0x712   :  { %913 = vmatprep.subr.mxu0 %v2389_v42 }
 0x713   :  { %914 = vmatpush1.msra.mxu0 %v2392_v43 }
 0x714   :  { %915 = vmatprep.subr.mxu0 %v2395_v44 }
 0x715   :  { %916 = vmatpush1.msra.mxu0 %v2398_v45 }
 0x716   :  { %917 = vmatprep.subr.mxu0 %v2401_v46 }
 0x717   :  { %918 = vmatpush1.msra.mxu0 %v2404_v47 }
 0x718   :  { %919 = vmatprep.subr.mxu0 %v2407_v48 }
 0x719   :  { %920 = vmatpush1.msra.mxu0 %v2410_v49 }
 0x71a   :  { %921 = vmatprep.subr.mxu0 %v2413_v50 }
 0x71b   :  { %922 = vmatpush1.msra.mxu0 %v2416_v51 }
 0x71c   :  { %923 = vmatprep.subr.mxu0 %v2419_v52 }
 0x71d   :  { %924 = vmatpush1.msra.mxu0 %v2422_v53 }
 0x71e   :  { %925 = vmatprep.subr.mxu0 %v2425_v54 }
 0x71f   :  { %926 = vmatpush1.msra.mxu0 %v2428_v55 }
 0x720   :  { %927 = vmatprep.subr.mxu0 %v2431_v56 }
 0x721   :  { %928 = vmatpush1.msra.mxu0 %v2434_v57 }
 0x722   :  { %929 = vmatprep.subr.mxu0 %v2437_v58 }
 0x723   :  { %930 = vmatpush1.msra.mxu0 %v2440_v59 }
 0x724   :  { %931 = vmatprep.subr.mxu0 %v2443_v60 }
 0x725   :  { %932 = vmatpush1.msra.mxu0 %v2446_v61 }
 0x726   :  { %933 = vmatprep.subr.mxu0 %v2449_v62 }
 0x727   :  { %934 = vmatpush1.msra.mxu0 %v2452_v63 }
 0x728   :  { %935 = vmatprep.subr.mxu0 %v2455_v0 }
 0x729   :  { %936 = vmatpush1.msra.mxu0 %v2458_v18 }
 0x72a   :  { %937 = vmatprep.subr.mxu0 %v2461_v19 }
 0x72b   :  { %938 = vmatpush1.msra.mxu0 %v2464_v20 }
 0x72c   :  { %939 = vmatprep.subr.mxu0 %v2473_v26 }
 0x72d   :  { %940 = vmatpush1.msra.mxu0 %v2476_v27 }
 0x72e   :  { %1253 = vmatprep.subr.mxu0 %v2301_v2 }
 0x773   :  { %v563_v37 = vpop.permute.xlu0 %562 }
 0x774   :  { %v565_v15 = vmul.f32 %v2016_v36, %v563_v37 }
 0x776   :  { %683 = vrot.lane.b32.xlu0 %v565_v15, %s2245_s8 }
 0x7ce   :  { %v859_v24 = vpop.f32.mrf.mxu0 }
 0x7d0   :  { %v861_v29 = vpop.f32.mrf.mxu0 }
 0x7d1   :  { %v866_v17 = vcombine.low %v859_v24, %v861_v29 }
 0x7d3   :  { %v873_v23 = vrot.slane %v866_v17, %v3110_v1 }
 0x7d5   :  { %v875_v35 = vadd.f32 %v873_v23, %v789_v30 }
 0x7d7   :  { %883 = vrot.lane.b32.xlu0 %v875_v35, %s2245_s8 }
 0x7e8   :  { %v684_v34 = vpop.permute.xlu0 %683 }
 0x7e9   :  { %v686_v33 = vsel %vm127_vm0, %v681_v25, %v684_v34 }
 0x7ea   :  { %752 = vmatmul.mubr.f32.vlgmr.msra.gmra.mxu1 %v686_v33 }
 0x7eb   :  { %1032 = vmatpush1.msra.mxu1 %v2303_v3  ;;  %1079 = vmatprep.mubr.f32.mxu1 %v3106_v31  ;;  %v3112_v3 = vld [vmem:[#allocation10_spill] sm:$0xff] }
 0x7ec   :  { %1033 = vmatprep.subr.mxu1 %v2305_v4  ;;  %v3113_v4 = vld [vmem:[#allocation11_spill] sm:$0xff] }
 0x7ed   :  { %1034 = vmatpush1.msra.mxu1 %v2308_v5  ;;  %v3114_v5 = vld [vmem:[#allocation12_spill] sm:$0xff] }
 0x7ee   :  { %1035 = vmatprep.subr.mxu1 %v2312_v6  ;;  %v3115_v6 = vld [vmem:[#allocation14_spill] sm:$0xff] }
 0x7ef   :  { %1036 = vmatpush1.msra.mxu1 %v2316_v7  ;;  %v1939_v7 = vmul.f32 -1.442695, %v875_v35 }
 0x7f0   :  { %1037 = vmatprep.subr.mxu1 %v2320_v8 }
 0x7f1   :  { %1038 = vmatpush1.msra.mxu1 %v2324_v9  ;;  %2017 = vpow2.f32 %v1939_v7 }
 0x7f2   :  { %1039 = vmatprep.subr.mxu1 %v2328_v10 }
 0x7f3   :  { %1040 = vmatpush1.msra.mxu1 %v2332_v11 }
 0x7f4   :  { %1041 = vmatprep.subr.mxu1 %v2336_v12 }
 0x7f5   :  { %1042 = vmatpush1.msra.mxu1 %v2340_v13 }
 0x7f6   :  { %1043 = vmatprep.subr.mxu1 %v2344_v14 }
 0x7f7   :  { %1044 = vmatpush1.msra.mxu1 %v3112_v3 }
 0x7f8   :  { %1045 = vmatprep.subr.mxu1 %v3113_v4 }
 0x7f9   :  { %1046 = vmatpush1.msra.mxu1 %v3114_v5 }
 0x7fa   :  { %1131 = vmatprep.subr.mxu1 %v3115_v6 }
 0x7fe   :  { %v2018_v8 = vpop.eup %2017 }
 0x7ff   :  { %v879_v9 = vadd.f32 1.0, %v2018_v8 }
 0x801   :  { %2019 = vrcp.f32 %v879_v9 }
 0x80e   :  { %v2020_v12 = vpop.eup %2019 }
 0x80f   :  { %v888_v37 = vmul.f32 %v2020_v12, %v2623_v22  ;;  %v897_v22 = vrot.slane %v2020_v12, 2 }
 0x849   :  { %v884_v10 = vpop.permute.xlu0 %883 }
 0x84a   :  { %v885_v11 = vrot.slane %v884_v10, 2 }
 0x84c   :  { %2021 = vtanh.f32 %v885_v11 }
 0x859   :  { %v2022_v13 = vpop.eup %2021 }
 0x85a   :  { %v889_v25 = vmul.f32 %v2022_v13, %v2020_v12 }
 0x85c   :  { %891 = vrot.lane.b32.xlu0 %v889_v25, %s2245_s8 }
 0x8aa   :  { %v753_v14 = vpop.f32.mrf.mxu1 }
 0x8ab   :  { %v754_v17 = vadd.f32 %v753_v14, %v2545_v38 }
 0x8ac   :  { %v755_v32 = vpop.f32.mrf.mxu1 }
 0x8ad   :  { %v756_v16 = vadd.f32 %v755_v32, %v3116_v28  ;;  %v1936_v30 = vmul.f32 -1.442695, %v754_v17 }
 0x8af   :  { %2023 = vtanh.f32 %v756_v16  ;;  %v1937_v11 = vmul.f32 -1.442695, %v756_v16 }
 0x8bc   :  { %v2024_v36 = vpop.eup %2023 }
 0x8bd   :  { %773 = vrot.lane.b32.xlu1 %v2024_v36, %s2245_s8 }
 0x8ce   :  { %v892_v15 = vpop.permute.xlu0 %891 }
 0x8cf   :  { %v2692_v24 = vadd.f32 %v892_v15, %v888_v37  ;;  %v1011_v15 = vld [vmem:[#allocation3 + $0x10] sm:$0xf] }
 0x8d1   :  { %2025 = vtanh.f32 %v2692_v24 }
 0x8d2   :  { %2027 = vpow2.f32 %v1936_v30 }
 0x8de   :  { %v2026_v29 = vpop.eup %2025 }
 0x8df   :  { %900 = vrot.lane.b32.xlu0 %v2026_v29, %s2245_s8  ;;  %v2028_v23 = vpop.eup %2027 }
 0x8e0   :  { %v764_v35 = vadd.f32 1.0, %v2028_v23 }
 0x8e2   :  { %2029 = vrcp.f32 %v764_v35 }
 0x8ef   :  { %v2030_v34 = vpop.eup %2029 }
 0x8f0   :  { %v771_v7 = vmul.f32 %v2030_v34, %v2628_v21 }
 0x92f   :  { %v774_v33 = vpop.permute.xlu1 %773 }
 0x930   :  { %v776_v3 = vmul.f32 %v2030_v34, %v774_v33  ;;  %v2741_v34 = vld [vmem:[#allocation5 + $0x70] sm:$0xff] }
 0x932   :  { %778 = vrot.lane.b32.xlu1 %v776_v3, %s2245_s8  ;;  %v2745_v3 = vld [vmem:[#allocation5 + $0x68] sm:$0xff] }
 0x951   :  { %v901_v4 = vpop.permute.xlu0 %900 }
 0x952   :  { %v903_v5 = vmul.f32 %v901_v4, %v897_v22  ;;  %v2748_v4 = vld [vmem:[#allocation5 + $0x60] sm:$0xff] }
 0x954   :  { %1942 = vmatmul.mubr.msk.f32.vlgmr.msra.gmra.mxu1 %vm127_vm0, %v903_v5 }
 0x955   :  { %1132 = vmatpush1.msra.mxu1 %v2380_v39  ;;  %1195 = vmatprep.mubr.f32.mxu1 %v3106_v31 }
 0x956   :  { %1133 = vmatprep.subr.mxu1 %v2382_v40 }
 0x957   :  { %1134 = vmatpush1.msra.mxu1 %v2385_v41 }
 0x958   :  { %1135 = vmatprep.subr.mxu1 %v2389_v42 }
 0x959   :  { %1136 = vmatpush1.msra.mxu1 %v2392_v43 }
 0x95a   :  { %1137 = vmatprep.subr.mxu1 %v2395_v44 }
 0x95b   :  { %1138 = vmatpush1.msra.mxu1 %v2398_v45 }
 0x95c   :  { %1139 = vmatprep.subr.mxu1 %v2401_v46 }
 0x95d   :  { %1140 = vmatpush1.msra.mxu1 %v2404_v47 }
 0x95e   :  { %1141 = vmatprep.subr.mxu1 %v2407_v48 }
 0x95f   :  { %1142 = vmatpush1.msra.mxu1 %v2410_v49 }
 0x960   :  { %1143 = vmatprep.subr.mxu1 %v2413_v50 }
 0x961   :  { %1144 = vmatpush1.msra.mxu1 %v2416_v51 }
 0x962   :  { %1145 = vmatprep.subr.mxu1 %v2419_v52 }
 0x963   :  { %1146 = vmatpush1.msra.mxu1 %v2422_v53 }
 0x964   :  { %1147 = vmatprep.subr.mxu1 %v2425_v54 }
 0x965   :  { %1148 = vmatpush1.msra.mxu1 %v2428_v55 }
 0x966   :  { %1149 = vmatprep.subr.mxu1 %v2431_v56 }
 0x967   :  { %1150 = vmatpush1.msra.mxu1 %v2434_v57 }
 0x968   :  { %1151 = vmatprep.subr.mxu1 %v2437_v58 }
 0x969   :  { %1152 = vmatpush1.msra.mxu1 %v2440_v59 }
 0x96a   :  { %1153 = vmatprep.subr.mxu1 %v2443_v60 }
 0x96b   :  { %1154 = vmatpush1.msra.mxu1 %v2446_v61 }
 0x96c   :  { %1155 = vmatprep.subr.mxu1 %v2449_v62 }
 0x96d   :  { %1156 = vmatpush1.msra.mxu1 %v2452_v63 }
 0x96e   :  { %1157 = vmatprep.subr.mxu1 %v2455_v0 }
 0x96f   :  { %1158 = vmatpush1.msra.mxu1 %v2458_v18 }
 0x970   :  { %1159 = vmatprep.subr.mxu1 %v2461_v19 }
 0x971   :  { %1160 = vmatpush1.msra.mxu1 %v2464_v20 }
 0x972   :  { %1161 = vmatprep.subr.mxu1 %v2473_v26 }
 0x973   :  { %1162 = vmatpush1.msra.mxu1 %v2476_v27 }
 0x974   :  { %1475 = vmatprep.subr.mxu1 %v2301_v2 }
 0x9a4   :  { %v779_v8 = vpop.permute.xlu1 %778 }
 0x9a5   :  { %v2733_v9 = vadd.f32 %v779_v8, %v771_v7  ;;  %v2754_v7 = vld [vmem:[#allocation5 + $0x50] sm:$0xff]  ;;  %v2757_v8 = vld [vmem:[#allocation5 + $0x48] sm:$0xff] }
 0x9a7   :  { %2031 = vtanh.f32 %v2733_v9 }
 0x9a8   :  { %2033 = vpow2.f32 %v1937_v11  ;;  %v2763_v11 = vld [vmem:[#allocation5 + $0x38] sm:$0xff] }
 0x9b4   :  { %v2032_v10 = vpop.eup %2031 }
 0x9b5   :  { %784 = vrot.lane.b32.xlu1 %v2032_v10, %s2245_s8  ;;  %v2034_v12 = vpop.eup %2033  ;;  %v2760_v10 = vld [vmem:[#allocation5 + $0x40] sm:$0xff] }
 0x9b6   :  { %v765_v13 = vadd.f32 1.0, %v2034_v12  ;;  %v2766_v12 = vld [vmem:[#allocation5 + $0x30] sm:$0xff] }
 0x9b8   :  { %2035 = vrcp.f32 %v765_v13  ;;  %v2769_v13 = vld [vmem:[#allocation5 + $0x28] sm:$0xff] }
 0x9c5   :  { %v2036_v36 = vpop.eup %2035 }
 0xa14   :  { %v1081_v25 = vpop.f32.mrf.mxu1 }
 0xa16   :  { %v1083_v14 = vpop.f32.mrf.mxu1 }
 0xa17   :  { %v1088_v32 = vcombine.low %v1081_v25, %v1083_v14  ;;  %v2772_v25 = vld [vmem:[#allocation5 + $0x20] sm:$0xff]  ;;  %v2775_v14 = vld [vmem:[#allocation5 + $0x18] sm:$0xff] }
 0xa19   :  { %v1095_v21 = vrot.slane %v1088_v32, %v3110_v1  ;;  %v2778_v32 = vld [vmem:[#allocation5 + $0x10] sm:$0xff] }
 0xa1b   :  { %v1097_v29 = vadd.f32 %v1095_v21, %v1011_v15 }
 0xa1d   :  { %v1943_v17 = vmul.f32 -1.442695, %v1097_v29 }
 0xa1f   :  { %2037 = vpow2.f32 %v1943_v17 }
 0xa27   :  { %v785_v2 = vpop.permute.xlu1 %784 }
 0xa28   :  { %v787_v37 = vmul.f32 %v2036_v36, %v785_v2  ;;  %v2781_v36 = vld [vmem:[#allocation5 + $0x8] sm:$0xff]  ;;  %v2784_v2 = vld [vmem:[#allocation5] sm:$0xff] }
 0xa2a   :  { %905 = vrot.lane.b32.xlu1 %v787_v37, %s2245_s8 }
 0xa2c   :  { %v2038_v16 = vpop.eup %2037 }
 0xa2d   :  { %v1101_v35 = vadd.f32 1.0, %v2038_v16 }
 0xa2e   :  { %1105 = vrot.lane.b32.xlu1 %v1097_v29, %s2245_s8 }
 0xa2f   :  { %2039 = vrcp.f32 %v1101_v35 }
 0xa3c   :  { %v2040_v21 = vpop.eup %2039 }
 0xa3d   :  { %v1110_v29 = vmul.f32 %v2040_v21, %v2692_v24  ;;  %v2860_v24 = vld [vmem:[#allocation7 + $0xf8] sm:$0xff] }
 0xa9c   :  { %v906_v30 = vpop.permute.xlu1 %905 }
 0xa9d   :  { %v908_v23 = vsel %vm127_vm0, %v903_v5, %v906_v30  ;;  %v2751_v5 = vld [vmem:[#allocation5 + $0x58] sm:$0xff] }
 0xa9e   :  { %974 = vmatmul.mubr.f32.vlgmr.msra.gmra.mxu0 %v908_v23 }
 0xa9f   :  { %1254 = vmatpush1.msra.mxu0 %v2741_v34  ;;  %1301 = vmatprep.mubr.f32.mxu0 %v3106_v31 }
 0xaa0   :  { %v1106_v33 = vpop.permute.xlu1 %1105  ;;  %1255 = vmatprep.subr.mxu0 %v2745_v3 }
 0xaa1   :  { %v1107_v22 = vrot.slane %v1106_v33, 2  ;;  %1256 = vmatpush1.msra.mxu0 %v2748_v4 }
 0xaa2   :  { %1257 = vmatprep.subr.mxu0 %v2751_v5 }
 0xaa3   :  { %2041 = vtanh.f32 %v1107_v22  ;;  %1258 = vmatpush1.msra.mxu0 %v2754_v7  ;;  %v1119_v22 = vrot.slane %v2040_v21, 2 }
 0xaa4   :  { %1259 = vmatprep.subr.mxu0 %v2757_v8 }
 0xaa5   :  { %1260 = vmatpush1.msra.mxu0 %v2760_v10 }
 0xaa6   :  { %1261 = vmatprep.subr.mxu0 %v2763_v11 }
 0xaa7   :  { %1262 = vmatpush1.msra.mxu0 %v2766_v12 }
 0xaa8   :  { %1263 = vmatprep.subr.mxu0 %v2769_v13 }
 0xaa9   :  { %1264 = vmatpush1.msra.mxu0 %v2772_v25 }
 0xaaa   :  { %1265 = vmatprep.subr.mxu0 %v2775_v14 }
 0xaab   :  { %1266 = vmatpush1.msra.mxu0 %v2778_v32 }
 0xaac   :  { %1267 = vmatprep.subr.mxu0 %v2781_v36 }
 0xaad   :  { %1268 = vmatpush1.msra.mxu0 %v2784_v2 }
 0xaae   :  { %1353 = vmatprep.subr.mxu0 %v3115_v6 }
 0xab0   :  { %v2042_v37 = vpop.eup %2041 }
 0xab1   :  { %v1111_v15 = vmul.f32 %v2042_v37, %v2040_v21 }
 0xab3   :  { %1113 = vrot.lane.b32.xlu1 %v1111_v15, %s2245_s8 }
 0xb25   :  { %v1114_v17 = vpop.permute.xlu1 %1113 }
 0xb26   :  { %v2790_v16 = vadd.f32 %v1114_v17, %v1110_v29 }
 0xb28   :  { %2043 = vtanh.f32 %v2790_v16 }
 0xb35   :  { %v2044_v30 = vpop.eup %2043 }
 0xb36   :  { %1122 = vrot.lane.b32.xlu1 %v2044_v30, %s2245_s8 }
 0xb5e   :  { %v975_v23 = vpop.f32.mrf.mxu0 }
 0xb60   :  { %v977_v35 = vpop.f32.mrf.mxu0 }
 0xb61   :  { %v978_v33 = vadd.f32 %v977_v35, %v3116_v28 }
 0xb63   :  { %2045 = vtanh.f32 %v978_v33 }
 0xb70   :  { %v2046_v6 = vpop.eup %2045 }
 0xb71   :  { %995 = vrot.lane.b32.xlu0 %v2046_v6, %s2245_s8 }
 0xba8   :  { %v1123_v37 = vpop.permute.xlu1 %1122 }
 0xba9   :  { %v2796_v15 = vmul.f32 %v1123_v37, %v1119_v22 }
 0xbab   :  { %1946 = vmatmul.mubr.msk.f32.vlgmr.msra.gmra.mxu0 %vm127_vm0, %v2796_v15 }
 0xbac   :  { %1354 = vmatpush1.msra.mxu0 %v2380_v39  ;;  %1417 = vmatprep.mubr.f32.mxu0 %v3106_v31  ;;  %v976_v39 = vadd.f32 %v975_v23, %v2545_v38 }
 0xbad   :  { %1355 = vmatprep.subr.mxu0 %v2382_v40 }
 0xbae   :  { %1356 = vmatpush1.msra.mxu0 %v2385_v41  ;;  %v1940_v40 = vmul.f32 -1.442695, %v976_v39  ;;  %v2144_v41 = vld [vmem:[#allocation5 + $0x78] sm:$0xff] }
 0xbaf   :  { %1357 = vmatprep.subr.mxu0 %v2389_v42 }
 0xbb0   :  { %1358 = vmatpush1.msra.mxu0 %v2392_v43  ;;  %2047 = vpow2.f32 %v1940_v40  ;;  %v2878_v40 = vld [vmem:[#allocation7 + $0xf0] sm:$0xff] }
 0xbb1   :  { %1359 = vmatprep.subr.mxu0 %v2395_v44 }
 0xbb2   :  { %1360 = vmatpush1.msra.mxu0 %v2398_v45 }
 0xbb3   :  { %1361 = vmatprep.subr.mxu0 %v2401_v46 }
 0xbb4   :  { %1362 = vmatpush1.msra.mxu0 %v2404_v47 }
 0xbb5   :  { %1363 = vmatprep.subr.mxu0 %v2407_v48 }
 0xbb6   :  { %1364 = vmatpush1.msra.mxu0 %v2410_v49 }
 0xbb7   :  { %1365 = vmatprep.subr.mxu0 %v2413_v50 }
 0xbb8   :  { %1366 = vmatpush1.msra.mxu0 %v2416_v51  ;;  %v1941_v51 = vmul.f32 -1.442695, %v978_v33 }
 0xbb9   :  { %1367 = vmatprep.subr.mxu0 %v2419_v52 }
 0xbba   :  { %1368 = vmatpush1.msra.mxu0 %v2422_v53 }
 0xbbb   :  { %1369 = vmatprep.subr.mxu0 %v2425_v54 }
 0xbbc   :  { %1370 = vmatpush1.msra.mxu0 %v2428_v55 }
 0xbbd   :  { %1371 = vmatprep.subr.mxu0 %v2431_v56  ;;  %v2048_v42 = vpop.eup %2047 }
 0xbbe   :  { %1372 = vmatpush1.msra.mxu0 %v2434_v57  ;;  %v986_v43 = vadd.f32 1.0, %v2048_v42  ;;  %v2885_v42 = vld [vmem:[#allocation7 + $0xe0] sm:$0xff] }
 0xbbf   :  { %1373 = vmatprep.subr.mxu0 %v2437_v58 }
 0xbc0   :  { %1374 = vmatpush1.msra.mxu0 %v2440_v59  ;;  %2049 = vrcp.f32 %v986_v43  ;;  %v2888_v43 = vld [vmem:[#allocation7 + $0xd8] sm:$0xff] }
 0xbc1   :  { %1375 = vmatprep.subr.mxu0 %v2443_v60 }
 0xbc2   :  { %1376 = vmatpush1.msra.mxu0 %v2446_v61  ;;  %v1233_v61 = vld [vmem:[#allocation3 + $0x14] sm:$0xf] }
 0xbc3   :  { %1377 = vmatprep.subr.mxu0 %v2449_v62 }
 0xbc4   :  { %1378 = vmatpush1.msra.mxu0 %v2452_v63 }
 0xbc5   :  { %1379 = vmatprep.subr.mxu0 %v2455_v0 }
 0xbc6   :  { %1380 = vmatpush1.msra.mxu0 %v2458_v18 }
 0xbc7   :  { %1381 = vmatprep.subr.mxu0 %v2461_v19 }
 0xbc8   :  { %1382 = vmatpush1.msra.mxu0 %v2464_v20 }
 0xbc9   :  { %1383 = vmatprep.subr.mxu0 %v2473_v26 }
 0xbca   :  { %1384 = vmatpush1.msra.mxu0 %v2476_v27 }
 0xbcb   :  { %1697 = vmatprep.subr.mxu0 %v2144_v41  ;;  %v2882_v41 = vld [vmem:[#allocation7 + $0xe8] sm:$0xff] }
 0xbcd   :  { %v2050_v44 = vpop.eup %2049 }
 0xbce   :  { %v993_v47 = vmul.f32 %v2050_v44, %v2733_v9 }
 0xbe3   :  { %v996_v45 = vpop.permute.xlu0 %995 }
 0xbe4   :  { %v998_v46 = vmul.f32 %v2050_v44, %v996_v45  ;;  %v2891_v44 = vld [vmem:[#allocation7 + $0xd0] sm:$0xff]  ;;  %v2894_v45 = vld [vmem:[#allocation7 + $0xc8] sm:$0xff] }
 0xbe6   :  { %1000 = vrot.lane.b32.xlu0 %v998_v46, %s2245_s8  ;;  %v2897_v46 = vld [vmem:[#allocation7 + $0xc0] sm:$0xff] }
 0xc58   :  { %v1001_v48 = vpop.permute.xlu0 %1000 }
 0xc59   :  { %v2835_v49 = vadd.f32 %v1001_v48, %v993_v47  ;;  %v2900_v47 = vld [vmem:[#allocation7 + $0xb8] sm:$0xff]  ;;  %v2903_v48 = vld [vmem:[#allocation7 + $0xb0] sm:$0xff] }
 0xc5b   :  { %2051 = vtanh.f32 %v2835_v49 }
 0xc5c   :  { %2053 = vpow2.f32 %v1941_v51  ;;  %v2909_v51 = vld [vmem:[#allocation7 + $0xa0] sm:$0xff] }
 0xc68   :  { %v2052_v50 = vpop.eup %2051 }
 0xc69   :  { %1006 = vrot.lane.b32.xlu0 %v2052_v50, %s2245_s8  ;;  %v2054_v52 = vpop.eup %2053  ;;  %v2906_v50 = vld [vmem:[#allocation7 + $0xa8] sm:$0xff] }
 0xc6a   :  { %v987_v53 = vadd.f32 1.0, %v2054_v52  ;;  %v2912_v52 = vld [vmem:[#allocation7 + $0x98] sm:$0xff] }
 0xc6b   :  { %v1303_v54 = vpop.f32.mrf.mxu0 }
 0xc6c   :  { %2055 = vrcp.f32 %v987_v53  ;;  %v2915_v53 = vld [vmem:[#allocation7 + $0x90] sm:$0xff] }
 0xc6d   :  { %v1305_v55 = vpop.f32.mrf.mxu0 }
 0xc6e   :  { %v1310_v56 = vcombine.low %v1303_v54, %v1305_v55  ;;  %v2918_v54 = vld [vmem:[#allocation7 + $0x88] sm:$0xff]  ;;  %v2921_v55 = vld [vmem:[#allocation7 + $0x80] sm:$0xff] }
 0xc70   :  { %v1317_v59 = vrot.slane %v1310_v56, %v3110_v1 }
 0xc72   :  { %v1319_v62 = vadd.f32 %v1317_v59, %v1233_v61  ;;  %v2931_v59 = vld [vmem:[#allocation7 + $0x68] sm:$0xff] }
 0xc74   :  { %v1947_v63 = vmul.f32 -1.442695, %v1319_v62 }
 0xc76   :  { %2057 = vpow2.f32 %v1947_v63  ;;  %v2940_v63 = vld [vmem:[#allocation7 + $0x50] sm:$0xff] }
 0xc79   :  { %v2056_v57 = vpop.eup %2055 }
 0xc83   :  { %v2058_v0 = vpop.eup %2057 }
 0xc84   :  { %v1323_v20 = vadd.f32 1.0, %v2058_v0  ;;  %v2943_v0 = vld [vmem:[#allocation7 + $0x48] sm:$0xff] }
 0xc86   :  { %2059 = vrcp.f32 %v1323_v20  ;;  %v2952_v20 = vld [vmem:[#allocation7 + $0x30] sm:$0xff] }
 0xc93   :  { %v2060_v9 = vpop.eup %2059 }
 0xc94   :  { %v1332_v17 = vmul.f32 %v2060_v9, %v2790_v16 }
 0xcdb   :  { %v1007_v58 = vpop.permute.xlu0 %1006 }
 0xcdc   :  { %v1009_v60 = vmul.f32 %v2056_v57, %v1007_v58  ;;  %v2925_v57 = vld [vmem:[#allocation7 + $0x78] sm:$0xff]  ;;  %v2928_v58 = vld [vmem:[#allocation7 + $0x70] sm:$0xff] }
 0xcde   :  { %1127 = vrot.lane.b32.xlu0 %v1009_v60, %s2245_s8  ;;  %v2934_v60 = vld [vmem:[#allocation7 + $0x60] sm:$0xff] }
 0xce2   :  { %1327 = vrot.lane.b32.xlu0 %v1319_v62, %s2245_s8  ;;  %v2937_v62 = vld [vmem:[#allocation7 + $0x58] sm:$0xff] }
 0xd50   :  { %v1128_v18 = vpop.permute.xlu0 %1127 }
 0xd51   :  { %v1130_v19 = vsel %vm127_vm0, %v2796_v15, %v1128_v18  ;;  %v1341_v15 = vrot.slane %v2060_v9, 2  ;;  %v2946_v18 = vld [vmem:[#allocation7 + $0x40] sm:$0xff] }
 0xd52   :  { %1196 = vmatmul.mubr.f32.vlgmr.msra.gmra.mxu1 %v1130_v19  ;;  %v2949_v19 = vld [vmem:[#allocation7 + $0x38] sm:$0xff] }
 0xd53   :  { %1476 = vmatpush1.msra.mxu1 %v2741_v34  ;;  %1523 = vmatprep.mubr.f32.mxu1 %v3106_v31 }
 0xd54   :  { %v1328_v26 = vpop.permute.xlu0 %1327  ;;  %1477 = vmatprep.subr.mxu1 %v2745_v3 }
 0xd55   :  { %v1329_v27 = vrot.slane %v1328_v26, 2  ;;  %1478 = vmatpush1.msra.mxu1 %v2748_v4  ;;  %v2955_v26 = vld [vmem:[#allocation7 + $0x28] sm:$0xff] }
 0xd56   :  { %1479 = vmatprep.subr.mxu1 %v2751_v5 }
 0xd57   :  { %2061 = vtanh.f32 %v1329_v27  ;;  %1480 = vmatpush1.msra.mxu1 %v2754_v7  ;;  %v2958_v27 = vld [vmem:[#allocation7 + $0x20] sm:$0xff] }
 0xd58   :  { %1481 = vmatprep.subr.mxu1 %v2757_v8 }
 0xd59   :  { %1482 = vmatpush1.msra.mxu1 %v2760_v10 }
 0xd5a   :  { %1483 = vmatprep.subr.mxu1 %v2763_v11 }
 0xd5b   :  { %1484 = vmatpush1.msra.mxu1 %v2766_v12 }
 0xd5c   :  { %1485 = vmatprep.subr.mxu1 %v2769_v13 }
 0xd5d   :  { %1486 = vmatpush1.msra.mxu1 %v2772_v25 }
 0xd5e   :  { %1487 = vmatprep.subr.mxu1 %v2775_v14 }
 0xd5f   :  { %1488 = vmatpush1.msra.mxu1 %v2778_v32 }
 0xd60   :  { %1489 = vmatprep.subr.mxu1 %v2781_v36 }
 0xd61   :  { %1490 = vmatpush1.msra.mxu1 %v2784_v2 }
 0xd62   :  { %1575 = vmatprep.subr.mxu1 %v2860_v24 }
 0xd64   :  { %v2062_v21 = vpop.eup %2061 }
 0xd65   :  { %v1333_v29 = vmul.f32 %v2062_v21, %v2060_v9  ;;  %v2961_v9 = vld [vmem:[#allocation7 + $0x18] sm:$0xff]  ;;  %v2964_v21 = vld [vmem:[#allocation7 + $0x10] sm:$0xff] }
 0xd66   :  { %3117 = vst [vmem:[#allocation13_spill] sm:$0xff] %v2961_v9  ;;  %3118 = vst [vmem:[#allocation10_spill] sm:$0xff] %v2964_v21 }
 0xd67   :  { %1335 = vrot.lane.b32.xlu0 %v1333_v29, %s2245_s8  ;;  %v2967_v29 = vld [vmem:[#allocation7 + $0x8] sm:$0xff] }
 0xd68   :  { %3119 = vst [vmem:[#allocation11_spill] sm:$0xff] %v2967_v29 }
 0xdd9   :  { %v1336_v30 = vpop.permute.xlu0 %1335 }
 0xdda   :  { %v2865_v23 = vadd.f32 %v1336_v30, %v1332_v17  ;;  %v2970_v17 = vld [vmem:[#allocation7] sm:$0xff] }
 0xddb   :  { %3120 = vst [vmem:[#allocation12_spill] sm:$0xff] %v2970_v17 }
 0xddc   :  { %2063 = vtanh.f32 %v2865_v23 }
 0xde9   :  { %v2064_v35 = vpop.eup %2063 }
 0xdea   :  { %1344 = vrot.lane.b32.xlu0 %v2064_v35, %s2245_s8 }
 0xe12   :  { %v1197_v33 = vpop.f32.mrf.mxu1 }
 0xe13   :  { %v1198_v56 = vadd.f32 %v1197_v33, %v2545_v38 }
 0xe14   :  { %v1199_v6 = vpop.f32.mrf.mxu1 }
 0xe15   :  { %v2870_v22 = vadd.f32 %v1199_v6, %v3116_v28  ;;  %v1944_v61 = vmul.f32 -1.442695, %v1198_v56 }
 0xe17   :  { %2065 = vtanh.f32 %v2870_v22 }
 0xe18   :  { %2067 = vpow2.f32 %v1944_v61 }
 0xe24   :  { %v2066_v37 = vpop.eup %2065 }
 0xe25   :  { %1217 = vrot.lane.b32.xlu1 %v2066_v37, %s2245_s8  ;;  %v2068_v30 = vpop.eup %2067 }
 0xe26   :  { %v1208_v35 = vadd.f32 1.0, %v2068_v30 }
 0xe28   :  { %2069 = vrcp.f32 %v1208_v35 }
 0xe35   :  { %v2070_v33 = vpop.eup %2069 }
 0xe5c   :  { %v1345_v16 = vpop.permute.xlu0 %1344 }
 0xe5d   :  { %v2874_v39 = vmul.f32 %v1345_v16, %v1341_v15  ;;  %v1215_v15 = vmul.f32 %v2070_v33, %v2835_v49 }
 0xe5f   :  { %1950 = vmatmul.mubr.msk.f32.vlgmr.msra.gmra.mxu1 %vm127_vm0, %v2874_v39 }
 0xe60   :  { %1576 = vmatpush1.msra.mxu1 %v2878_v40  ;;  %1639 = vmatprep.mubr.f32.mxu1 %v3106_v31 }
 0xe61   :  { %1577 = vmatprep.subr.mxu1 %v2882_v41 }
 0xe62   :  { %1578 = vmatpush1.msra.mxu1 %v2885_v42 }
 0xe63   :  { %1579 = vmatprep.subr.mxu1 %v2888_v43 }
 0xe64   :  { %1580 = vmatpush1.msra.mxu1 %v2891_v44 }
 0xe65   :  { %1581 = vmatprep.subr.mxu1 %v2894_v45 }
 0xe66   :  { %1582 = vmatpush1.msra.mxu1 %v2897_v46 }
 0xe67   :  { %1583 = vmatprep.subr.mxu1 %v2900_v47 }
 0xe68   :  { %1584 = vmatpush1.msra.mxu1 %v2903_v48 }
 0xe69   :  { %1585 = vmatprep.subr.mxu1 %v2906_v50 }
 0xe6a   :  { %1586 = vmatpush1.msra.mxu1 %v2909_v51 }
 0xe6b   :  { %1587 = vmatprep.subr.mxu1 %v2912_v52 }
 0xe6c   :  { %1588 = vmatpush1.msra.mxu1 %v2915_v53 }
 0xe6d   :  { %1589 = vmatprep.subr.mxu1 %v2918_v54 }
 0xe6e   :  { %1590 = vmatpush1.msra.mxu1 %v2921_v55 }
 0xe6f   :  { %1591 = vmatprep.subr.mxu1 %v2925_v57 }
 0xe70   :  { %1592 = vmatpush1.msra.mxu1 %v2928_v58 }
 0xe71   :  { %1593 = vmatprep.subr.mxu1 %v2931_v59 }
 0xe72   :  { %1594 = vmatpush1.msra.mxu1 %v2934_v60 }
 0xe73   :  { %1595 = vmatprep.subr.mxu1 %v2937_v62 }
 0xe74   :  { %1596 = vmatpush1.msra.mxu1 %v2940_v63 }
 0xe75   :  { %1597 = vmatprep.subr.mxu1 %v2943_v0 }
 0xe76   :  { %1598 = vmatpush1.msra.mxu1 %v2946_v18 }
 0xe77   :  { %1599 = vmatprep.subr.mxu1 %v2949_v19 }
 0xe78   :  { %1600 = vmatpush1.msra.mxu1 %v2952_v20 }
 0xe79   :  { %1601 = vmatprep.subr.mxu1 %v2955_v26 }
 0xe7a   :  { %1602 = vmatpush1.msra.mxu1 %v2958_v27 }
 0xe7b   :  { %1603 = vmatprep.subr.mxu1 %v2961_v9 }
 0xe7c   :  { %1604 = vmatpush1.msra.mxu1 %v2964_v21 }
 0xe7d   :  { %1605 = vmatprep.subr.mxu1 %v2967_v29 }
 0xe7e   :  { %1606 = vmatpush1.msra.mxu1 %v2970_v17  ;;  %v1945_v17 = vmul.f32 -1.442695, %v2870_v22 }
 0xe97   :  { %v1218_v6 = vpop.permute.xlu1 %1217 }
 0xe98   :  { %v1220_v37 = vmul.f32 %v2070_v33, %v1218_v6 }
 0xe9a   :  { %1222 = vrot.lane.b32.xlu1 %v1220_v37, %s2245_s8 }
 0xf0c   :  { %v1223_v16 = vpop.permute.xlu1 %1222 }
 0xf0d   :  { %v2975_v56 = vadd.f32 %v1223_v16, %v1215_v15  ;;  %v1455_v15 = vld [vmem:[#allocation3 + $0x18] sm:$0xf] }
 0xf0f   :  { %2071 = vtanh.f32 %v2975_v56 }
 0xf10   :  { %2073 = vpow2.f32 %v1945_v17 }
 0xf1c   :  { %v2072_v61 = vpop.eup %2071 }
 0xf1d   :  { %1228 = vrot.lane.b32.xlu1 %v2072_v61, %s2245_s8  ;;  %v2074_v30 = vpop.eup %2073 }
 0xf1e   :  { %v1209_v35 = vadd.f32 1.0, %v2074_v30 }
 0xf1f   :  { %v1525_v29 = vpop.f32.mrf.mxu1 }
 0xf20   :  { %2075 = vrcp.f32 %v1209_v35 }
 0xf21   :  { %v1527_v6 = vpop.f32.mrf.mxu1 }
 0xf22   :  { %v1532_v21 = vcombine.low %v1525_v29, %v1527_v6 }
 0xf24   :  { %v1539_v49 = vrot.slane %v1532_v21, %v3110_v1 }
 0xf26   :  { %v1541_v16 = vadd.f32 %v1539_v49, %v1455_v15 }
 0xf28   :  { %v1951_v61 = vmul.f32 -1.442695, %v1541_v16 }
 0xf2a   :  { %2077 = vpow2.f32 %v1951_v61 }
 0xf2d   :  { %v2076_v37 = vpop.eup %2075 }
 0xf37   :  { %v2078_v22 = vpop.eup %2077 }
 0xf38   :  { %v1545_v35 = vadd.f32 1.0, %v2078_v22 }
 0xf3a   :  { %2079 = vrcp.f32 %v1545_v35 }
 0xf8f   :  { %v1229_v9 = vpop.permute.xlu1 %1228 }
 0xf90   :  { %v1231_v33 = vmul.f32 %v2076_v37, %v1229_v9 }
 0xf92   :  { %1349 = vrot.lane.b32.xlu1 %v1231_v33, %s2245_s8 }
 0xf96   :  { %1549 = vrot.lane.b32.xlu1 %v1541_v16, %s2245_s8 }
0x1004   :  { %v1350_v17 = vpop.permute.xlu1 %1349 }
0x1005   :  { %v1352_v30 = vsel %vm127_vm0, %v2874_v39, %v1350_v17  ;;  %v3123_v39 = vld [vmem:[#allocation11_spill] sm:$0xff] }
0x1006   :  { %1418 = vmatmul.mubr.f32.vlgmr.msra.gmra.mxu0 %v1352_v30 }
0x1007   :  { %1698 = vmatpush1.msra.mxu0 %v2741_v34  ;;  %1745 = vmatprep.mubr.f32.mxu0 %v3106_v31  ;;  %v2080_v34 = vpop.eup %2079 }
0x1008   :  { %v1550_v9 = vpop.permute.xlu1 %1549  ;;  %1699 = vmatprep.subr.mxu0 %v2745_v3 }
0x1009   :  { %v1551_v21 = vrot.slane %v1550_v9, 2  ;;  %1700 = vmatpush1.msra.mxu0 %v2748_v4 }
0x100a   :  { %1701 = vmatprep.subr.mxu0 %v2751_v5  ;;  %v1554_v5 = vmul.f32 %v2080_v34, %v2865_v23  ;;  %v3122_v23 = vld [vmem:[#allocation10_spill] sm:$0xff] }
0x100b   :  { %2081 = vtanh.f32 %v1551_v21  ;;  %1702 = vmatpush1.msra.mxu0 %v2754_v7 }
0x100c   :  { %1703 = vmatprep.subr.mxu0 %v2757_v8 }
0x100d   :  { %1704 = vmatpush1.msra.mxu0 %v2760_v10 }
0x100e   :  { %1705 = vmatprep.subr.mxu0 %v2763_v11 }
0x100f   :  { %1706 = vmatpush1.msra.mxu0 %v2766_v12 }
0x1010   :  { %1707 = vmatprep.subr.mxu0 %v2769_v13 }
0x1011   :  { %1708 = vmatpush1.msra.mxu0 %v2772_v25 }
0x1012   :  { %1709 = vmatprep.subr.mxu0 %v2775_v14  ;;  %v1563_v14 = vrot.slane %v2080_v34, 2 }
0x1013   :  { %1710 = vmatpush1.msra.mxu0 %v2778_v32 }
0x1014   :  { %1711 = vmatprep.subr.mxu0 %v2781_v36 }
0x1015   :  { %1712 = vmatpush1.msra.mxu0 %v2784_v2 }
0x1016   :  { %1797 = vmatprep.subr.mxu0 %v2860_v24  ;;  %v3121_v24 = vld [vmem:[#allocation13_spill] sm:$0xff] }
0x1018   :  { %v2082_v3 = vpop.eup %2081 }
0x1019   :  { %v1555_v4 = vmul.f32 %v2082_v3, %v2080_v34 }
0x101b   :  { %1557 = vrot.lane.b32.xlu1 %v1555_v4, %s2245_s8 }
0x108d   :  { %v1558_v7 = vpop.permute.xlu1 %1557 }
0x108e   :  { %v3004_v8 = vadd.f32 %v1558_v7, %v1554_v5 }
0x1090   :  { %2083 = vtanh.f32 %v3004_v8 }
0x109d   :  { %v2084_v10 = vpop.eup %2083 }
0x109e   :  { %1566 = vrot.lane.b32.xlu1 %v2084_v10, %s2245_s8 }
0x10c6   :  { %v1419_v11 = vpop.f32.mrf.mxu0 }
0x10c8   :  { %v1421_v12 = vpop.f32.mrf.mxu0 }
0x10c9   :  { %v1422_v13 = vadd.f32 %v1421_v12, %v3116_v28 }
0x10cb   :  { %2085 = vtanh.f32 %v1422_v13 }
0x10d8   :  { %v2086_v25 = vpop.eup %2085 }
0x10d9   :  { %1439 = vrot.lane.b32.xlu0 %v2086_v25, %s2245_s8 }
0x1110   :  { %v1567_v32 = vpop.permute.xlu1 %1566 }
0x1111   :  { %v3010_v36 = vmul.f32 %v1567_v32, %v1563_v14 }
0x1113   :  { %1954 = vmatmul.mubr.msk.f32.vlgmr.msra.gmra.mxu0 %vm127_vm0, %v3010_v36 }
0x1114   :  { %1798 = vmatpush1.msra.mxu0 %v2878_v40  ;;  %1861 = vmatprep.mubr.f32.mxu0 %v3106_v31  ;;  %v1420_v31 = vadd.f32 %v1419_v11, %v2545_v38  ;;  %v3124_v40 = vld [vmem:[#allocation12_spill] sm:$0xff] }
0x1115   :  { %1799 = vmatprep.subr.mxu0 %v2882_v41 }
0x1116   :  { %1800 = vmatpush1.msra.mxu0 %v2885_v42  ;;  %v1948_v2 = vmul.f32 -1.442695, %v1420_v31 }
0x1117   :  { %1801 = vmatprep.subr.mxu0 %v2888_v43 }
0x1118   :  { %1802 = vmatpush1.msra.mxu0 %v2891_v44  ;;  %2087 = vpow2.f32 %v1948_v2 }
0x1119   :  { %1803 = vmatprep.subr.mxu0 %v2894_v45 }
0x111a   :  { %1804 = vmatpush1.msra.mxu0 %v2897_v46 }
0x111b   :  { %1805 = vmatprep.subr.mxu0 %v2900_v47 }
0x111c   :  { %1806 = vmatpush1.msra.mxu0 %v2903_v48 }
0x111d   :  { %1807 = vmatprep.subr.mxu0 %v2906_v50 }
0x111e   :  { %1808 = vmatpush1.msra.mxu0 %v2909_v51  ;;  %v1949_v51 = vmul.f32 -1.442695, %v1422_v13 }
0x111f   :  { %1809 = vmatprep.subr.mxu0 %v2912_v52 }
0x1120   :  { %1810 = vmatpush1.msra.mxu0 %v2915_v53 }
0x1121   :  { %1811 = vmatprep.subr.mxu0 %v2918_v54 }
0x1122   :  { %1812 = vmatpush1.msra.mxu0 %v2921_v55 }
0x1123   :  { %1813 = vmatprep.subr.mxu0 %v2925_v57 }
0x1124   :  { %1814 = vmatpush1.msra.mxu0 %v2928_v58 }
0x1125   :  { %1815 = vmatprep.subr.mxu0 %v2931_v59  ;;  %v2088_v41 = vpop.eup %2087 }
0x1126   :  { %1816 = vmatpush1.msra.mxu0 %v2934_v60  ;;  %v1430_v42 = vadd.f32 1.0, %v2088_v41 }
0x1127   :  { %1817 = vmatprep.subr.mxu0 %v2937_v62 }
0x1128   :  { %1818 = vmatpush1.msra.mxu0 %v2940_v63  ;;  %2089 = vrcp.f32 %v1430_v42  ;;  %v1677_v63 = vld [vmem:[#allocation3 + $0x1c] sm:$0xf] }
0x1129   :  { %1819 = vmatprep.subr.mxu0 %v2943_v0 }
0x112a   :  { %1820 = vmatpush1.msra.mxu0 %v2946_v18 }
0x112b   :  { %1821 = vmatprep.subr.mxu0 %v2949_v19 }
0x112c   :  { %1822 = vmatpush1.msra.mxu0 %v2952_v20 }
0x112d   :  { %1823 = vmatprep.subr.mxu0 %v2955_v26 }
0x112e   :  { %1824 = vmatpush1.msra.mxu0 %v2958_v27 }
0x112f   :  { %1825 = vmatprep.subr.mxu0 %v3121_v24 }
0x1130   :  { %1826 = vmatpush1.msra.mxu0 %v3122_v23 }
0x1131   :  { %1827 = vmatprep.subr.mxu0 %v3123_v39 }
0x1132   :  { %1828 = vmatpush1.msra.mxu0 %v3124_v40 }
0x1135   :  { %v2090_v43 = vpop.eup %2089 }
0x1136   :  { %v1437_v46 = vmul.f32 %v2090_v43, %v2975_v56 }
0x114b   :  { %v1440_v44 = vpop.permute.xlu0 %1439 }
0x114c   :  { %v1442_v45 = vmul.f32 %v2090_v43, %v1440_v44 }
0x114e   :  { %1444 = vrot.lane.b32.xlu0 %v1442_v45, %s2245_s8 }
0x11c0   :  { %v1445_v47 = vpop.permute.xlu0 %1444 }
0x11c1   :  { %v1447_v48 = vadd.f32 %v1445_v47, %v1437_v46 }
0x11c3   :  { %2091 = vtanh.f32 %v1447_v48 }
0x11c4   :  { %2093 = vpow2.f32 %v1949_v51 }
0x11d0   :  { %v2092_v50 = vpop.eup %2091 }
0x11d1   :  { %1450 = vrot.lane.b32.xlu0 %v2092_v50, %s2245_s8  ;;  %v2094_v52 = vpop.eup %2093 }
0x11d2   :  { %v1431_v53 = vadd.f32 1.0, %v2094_v52 }
0x11d3   :  { %v1747_v54 = vpop.f32.mrf.mxu0 }
0x11d4   :  { %2095 = vrcp.f32 %v1431_v53 }
0x11d5   :  { %v1749_v55 = vpop.f32.mrf.mxu0 }
0x11d6   :  { %v1754_v57 = vcombine.low %v1747_v54, %v1749_v55 }
0x11d8   :  { %v1761_v60 = vrot.slane %v1754_v57, %v3110_v1 }
0x11da   :  { %v1763_v0 = vadd.f32 %v1761_v60, %v1677_v63  ;;  %v1958_v60 = vld [vmem:[%s3080_s4] ss:$0 sm:$0xff] }
0x11dc   :  { %v1955_v18 = vmul.f32 -1.442695, %v1763_v0 }
0x11de   :  { %2097 = vpow2.f32 %v1955_v18  ;;  %v1959_v18 = vld [vmem:[#allocation2] ss:$0 sm:$0xff] }
0x11e1   :  { %v2096_v58 = vpop.eup %2095 }
0x11eb   :  { %v2098_v19 = vpop.eup %2097 }
0x11ec   :  { %v1767_v27 = vadd.f32 1.0, %v2098_v19 }
0x11ee   :  { %2099 = vrcp.f32 %v1767_v27 }
0x11fb   :  { %v2100_v1 = vpop.eup %2099 }
0x11fc   :  { %v1776_v49 = vmul.f32 %v2100_v1, %v3004_v8  ;;  %v1785_v2 = vrot.slane %v2100_v1, 2 }
0x1243   :  { %v1451_v59 = vpop.permute.xlu0 %1450 }
0x1244   :  { %v1453_v62 = vmul.f32 %v2096_v58, %v1451_v59 }
0x1246   :  { %1571 = vrot.lane.b32.xlu0 %v1453_v62, %s2245_s8 }
0x124a   :  { %1771 = vrot.lane.b32.xlu0 %v1763_v0, %s2245_s8 }
0x12b8   :  { %v1572_v20 = vpop.permute.xlu0 %1571 }
0x12b9   :  { %v1574_v26 = vsel %vm127_vm0, %v3010_v36, %v1572_v20 }
0x12ba   :  { %1640 = vmatmul.mubr.f32.vlgmr.msra.gmra.mxu1 %v1574_v26 }
0x12bc   :  { %v1772_v29 = vpop.permute.xlu0 %1771 }
0x12bd   :  { %v1773_v56 = vrot.slane %v1772_v29, 2 }
0x12bf   :  { %2101 = vtanh.f32 %v1773_v56 }
0x12cc   :  { %v2102_v6 = vpop.eup %2101 }
0x12cd   :  { %v1777_v37 = vmul.f32 %v2102_v6, %v2100_v1 }
0x12cf   :  { %1779 = vrot.lane.b32.xlu0 %v1777_v37, %s2245_s8 }
0x1341   :  { %v1780_v33 = vpop.permute.xlu0 %1779 }
0x1342   :  { %v1782_v15 = vadd.f32 %v1780_v33, %v1776_v49 }
0x1344   :  { %2103 = vtanh.f32 %v1782_v15 }
0x1351   :  { %v2104_v16 = vpop.eup %2103 }
0x1352   :  { %1788 = vrot.lane.b32.xlu0 %v2104_v16, %s2245_s8 }
0x137a   :  { %v1641_v61 = vpop.f32.mrf.mxu1 }
0x137b   :  { %v1642_v35 = vadd.f32 %v1641_v61, %v2545_v38 }
0x137c   :  { %v1643_v22 = vpop.f32.mrf.mxu1 }
0x137d   :  { %v1644_v17 = vadd.f32 %v1643_v22, %v3116_v28  ;;  %v1952_v9 = vmul.f32 -1.442695, %v1642_v35 }
0x137f   :  { %2105 = vtanh.f32 %v1644_v17  ;;  %v1953_v12 = vmul.f32 -1.442695, %v1644_v17 }
0x1380   :  { %2107 = vpow2.f32 %v1952_v9 }
0x138c   :  { %v2106_v30 = vpop.eup %2105 }
0x138d   :  { %1661 = vrot.lane.b32.xlu1 %v2106_v30, %s2245_s8  ;;  %v2108_v21 = vpop.eup %2107 }
0x138e   :  { %v1652_v34 = vadd.f32 1.0, %v2108_v21 }
0x1390   :  { %2109 = vrcp.f32 %v1652_v34 }
0x139d   :  { %v2110_v3 = vpop.eup %2109 }
0x139e   :  { %v1659_v7 = vmul.f32 %v2110_v3, %v1447_v48 }
0x13c4   :  { %v1789_v31 = vpop.permute.xlu0 %1788 }
0x13c5   :  { %v1791_v24 = vmul.f32 %v1789_v31, %v1785_v2 }
0x13ff   :  { %v1662_v4 = vpop.permute.xlu1 %1661 }
0x1400   :  { %v1664_v5 = vmul.f32 %v2110_v3, %v1662_v4 }
0x1402   :  { %1666 = vrot.lane.b32.xlu1 %v1664_v5, %s2245_s8 }
0x1474   :  { %v1667_v8 = vpop.permute.xlu1 %1666 }
0x1475   :  { %v1669_v10 = vadd.f32 %v1667_v8, %v1659_v7 }
0x1477   :  { %2111 = vtanh.f32 %v1669_v10 }
0x1478   :  { %2113 = vpow2.f32 %v1953_v12 }
0x1484   :  { %v2112_v11 = vpop.eup %2111 }
0x1485   :  { %1672 = vrot.lane.b32.xlu1 %v2112_v11, %s2245_s8  ;;  %v2114_v13 = vpop.eup %2113 }
0x1486   :  { %v1653_v25 = vadd.f32 1.0, %v2114_v13 }
0x1488   :  { %2115 = vrcp.f32 %v1653_v25 }
0x1495   :  { %v2116_v14 = vpop.eup %2115 }
0x14f7   :  { %v1673_v32 = vpop.permute.xlu1 %1672 }
0x14f8   :  { %v1675_v36 = vmul.f32 %v2116_v14, %v1673_v32 }
0x14fa   :  { %1793 = vrot.lane.b32.xlu1 %v1675_v36, %s2245_s8 }
0x156c   :  { %v1794_v23 = vpop.permute.xlu1 %1793 }
0x156d   :  { %v1796_v39 = vsel %vm127_vm0, %v1791_v24, %v1794_v23 }
0x156e   :  { %1862 = vmatmul.mubr.f32.vlgmr.msra.gmra.mxu0 %v1796_v39 }
0x162e   :  { %v1863_v40 = vpop.f32.mrf.mxu0 }
0x162f   :  { %v1864_v44 = vadd.f32 %v1863_v40, %v2545_v38 }
0x1630   :  { %v1865_v41 = vpop.f32.mrf.mxu0 }
0x1631   :  { %v1866_v42 = vadd.f32 %v1865_v41, %v3116_v28  ;;  %v1956_v45 = vmul.f32 -1.442695, %v1864_v44 }
0x1633   :  { %2117 = vtanh.f32 %v1866_v42  ;;  %v1957_v55 = vmul.f32 -1.442695, %v1866_v42 }
0x1634   :  { %2119 = vpow2.f32 %v1956_v45 }
0x1640   :  { %v2118_v43 = vpop.eup %2117 }
0x1641   :  { %1883 = vrot.lane.b32.xlu0 %v2118_v43, %s2245_s8  ;;  %v2120_v46 = vpop.eup %2119 }
0x1642   :  { %v1874_v47 = vadd.f32 1.0, %v2120_v46 }
0x1644   :  { %2121 = vrcp.f32 %v1874_v47 }
0x1651   :  { %v2122_v48 = vpop.eup %2121 }
0x1652   :  { %v1881_v52 = vmul.f32 %v2122_v48, %v1669_v10 }
0x16b3   :  { %v1884_v50 = vpop.permute.xlu0 %1883 }
0x16b4   :  { %v1886_v51 = vmul.f32 %v2122_v48, %v1884_v50 }
0x16b6   :  { %1888 = vrot.lane.b32.xlu1 %v1886_v51, %s2245_s8 }
0x1728   :  { %v1889_v53 = vpop.permute.xlu1 %1888 }
0x1729   :  { %v1891_v54 = vadd.f32 %v1889_v53, %v1881_v52 }
0x172b   :  { %2123 = vtanh.f32 %v1891_v54 }
0x172c   :  { %2125 = vpow2.f32 %v1957_v55 }
0x1738   :  { %v2124_v28 = vpop.eup %2123 }
0x1739   :  { %1894 = vrot.lane.b32.xlu0 %v2124_v28, %s2245_s8  ;;  %v2126_v38 = vpop.eup %2125 }
0x173a   :  { %v1875_v57 = vadd.f32 1.0, %v2126_v38 }
0x173c   :  { %2127 = vrcp.f32 %v1875_v57 }
0x1749   :  { %v2128_v58 = vpop.eup %2127 }
0x17ab   :  { %v1895_v59 = vpop.permute.xlu0 %1894 }
0x17ac   :  { %v1897_v62 = vmul.f32 %v2128_v58, %v1895_v59 }
0x17ae   :  { %v1905_v63 = vmul.f32 %v1958_v60, %v1897_v62 }
0x17b0   :  { %v1907_v0 = vsel %vm1906_vm1, %v1905_v63, 0.0 }
0x17b1   :  { %1908 = vadd.xlane.f32.xlu1 %v1907_v0 }
0x183a   :  { %v1909_v19 = vpop.xlane.xlu1 %1908 }
0x183b   :  { %v1917_v20 = vadd.f32 %v1959_v18, %v1909_v19 }
0x183d   :  { %1919 = vst.msk [vmem:[%s3082_s6] sm:$0x3] %vm1918_vm2, %v1917_v20 }
0x183e   :  { %1924 = vsyncpa [#allocation4], 1 }
0x183f   :  { %1925 = vsyncpa [#allocation6], 1 }

</bundles_post_ra>
